<compile_context>
chip_gen: v7x
topology: tpu7x:2x2x1
jax: 0.10.0
libtpu: 0.0.40
codegen_flags: <defaults>
</compile_context>

<pallas_src>
import jax
import jax.numpy as jnp
from jax import lax
from jax.experimental import pallas as pl
from jax.experimental.pallas import tpu as pltpu


# ----- synthetic ConstV config (the torch module reads these module globals) -----
class ConstV:
    num_levels = 3                       # pyramid levels
    output_level = 2                     # number of pooled targets (plus raw target)
    weightsls = [0.32, 0.08, 0.02]       # per-level loss weights (len = output_level + 1)


# ============================ budgets / tiling ============================

def _vmem_capacity_bytes():
    try:
        info = pltpu.get_tpu_info()
        for name in ("vmem_capacity_bytes", "vmem_size_bytes", "vmem_bytes"):
            v = getattr(info, name, None)
            if v:
                return int(v)
    except Exception:
        pass
    return 64 * 1024 * 1024              # v7x per-TensorCore VMEM (the smallest)


def _budgets(tile_budget, vmem_limit):
    cap = _vmem_capacity_bytes()
    if vmem_limit is None:
        # Headroom below physical VMEM: ~96 MiB on v5e/v6e (128 MiB), ~48 MiB on v7x (64 MiB).
        vmem_limit = min(cap * 3 // 4, 96 * 1024 * 1024)
    if tile_budget is None:
        # Double-buffered raw-target tile + double-buffered full-res output tile +
        # pooled output tiles + in-kernel intermediates ~= 6x the raw tile.
        tile_budget = min(vmem_limit // 6, 16 * 1024 * 1024)
    return int(tile_budget), int(vmem_limit), int(cap)


def _choose_row_tile(H, k_max, bytes_per_raw_row, budget_bytes):
    """Raw-target rows per grid step.

    Legal extents divide H and are either a multiple of 8*k_max (so every level's
    block rows stay sublane-aligned) or the full extent H.  Picks the largest legal
    extent whose raw tile fits the byte budget; if none fits, returns the smallest
    legal extent (bounded tile) and the caller raises vmem_limit_bytes to cover it.
    """
    align = 8 * k_max
    candidates = [d for d in range(align, H, align) if H % d == 0] + [H]
    max_rows = max(1, budget_bytes // bytes_per_raw_row)
    fitting = [d for d in candidates if d <= max_rows]
    if fitting:
        return max(fitting)
    # TODO(synk): for pathological H with no aligned divisor, a padded grid with a
    # masked last tile would bound the tile size better than the smallest divisor.
    return min(candidates)


# ============================ fused multi-level kernel ============================

def _make_fused_kernel(level_cfg, C, tH, W, inv_elem, inv_pix):
    L = len(level_cfg)
    n_pool = sum(1 for k, _ in level_cfg if k > 1)

    def kernel(*refs):
        o_refs = refs[:L]                                    # per-level prediction tiles
        t_ref = refs[L]                                      # raw target tile (C, tH, W)
        b_refs = refs[L + 1:L + 1 + n_pool]                  # lane-pooling one-hot mats
        out_refs = refs[L + 1 + n_pool:L + 1 + n_pool + 2 * L]
        acc_refs = refs[L + 1 + n_pool + 2 * L:]             # (1, W_l) partials per level

        r = pl.program_id(1)

        @pl.when(r == 0)
        def _init():
            for acc in acc_refs:
                acc[...] = jnp.zeros_like(acc)

        bi = 0
        for l, (k, scale) in enumerate(level_cfg):
            tH_l, W_l = tH // k, W // k
            o_l = o_refs[l][...].astype(jnp.float32)                       # (C, tH_l, W_l)
            if k > 1:
                # Row (sublane) pooling on the VPU: k sublane-strided reads of the
                # resident raw-target tile + k-1 adds (exact, no MXU involved).
                rp = t_ref[:, pl.ds(0, tH_l, stride=k), :].astype(jnp.float32)
                for s in range(1, k):
                    rp = rp + t_ref[:, pl.ds(s, tH_l, stride=k), :].astype(jnp.float32)
                # Column (lane) pooling: one channel-stacked one-hot MXU contraction on
                # the already k-x-smaller rows. 1/(k*k*scale) is folded into B (exact
                # powers of two) and HIGHEST keeps the f32 pooling exact vs. reference.
                p2 = lax.dot_general(
                    rp.reshape(C * tH_l, W), b_refs[bi][...],
                    (((1,), (0,)), ((), ())),
                    precision=lax.Precision.HIGHEST,
                    preferred_element_type=jnp.float32)
                p_l = p2.reshape(C, tH_l, W_l)
                bi += 1
            else:
                t_l = t_ref[...].astype(jnp.float32)
                p_l = t_l if scale == 1 else t_l * jnp.float32(1.0 / scale)

            d = p_l - o_l                                                  # (C, tH_l, W_l)
            # Deferred lane reduction: reduce channels (cheap VPU adds across slabs) and
            # sublanes per step; the single cross-lane reduce happens in the epilogue.
            l1_rows = jnp.sum(jnp.abs(d), axis=0)                          # (tH_l, W_l)
            acc_refs[2 * l][...] += jnp.sum(l1_rows, axis=0, keepdims=True)
            epe_rows = jnp.sqrt(jnp.sum(d * d, axis=0))                    # (tH_l, W_l)
            acc_refs[2 * l + 1][...] += jnp.sum(epe_rows, axis=0, keepdims=True)

        @pl.when(r == pl.num_programs(1) - 1)
        def _finalize():
            for l in range(L):
                l1 = jnp.sum(acc_refs[2 * l][...], axis=1, keepdims=True)
                epe = jnp.sum(acc_refs[2 * l + 1][...], axis=1, keepdims=True)
                out_refs[2 * l][...] = l1 * inv_elem[l]
                out_refs[2 * l + 1][...] = epe * inv_pix[l]

    return kernel


def multiscale_losses(outputs, target, level_cfg, *, tile_budget=None, vmem_limit=None):
    """One fused pass: streams the raw NCHW target once, pools it on the fly for every
    pyramid level, and returns per-level (mean L1, mean EPE) scalars."""
    N, C, H, W = target.shape
    L = len(level_cfg)
    assert len(outputs) == L
    k_max = max(k for k, _ in level_cfg)
    assert H % k_max == 0 and W % k_max == 0
    for o, (k, _) in zip(outputs, level_cfg):
        assert o.shape == (N, C, H // k, W // k), (o.shape, k)

    tile_budget, vmem_limit, cap = _budgets(tile_budget, vmem_limit)
    bytes_per_raw_row = C * W * target.dtype.itemsize
    tH = _choose_row_tile(H, k_max, bytes_per_raw_row, tile_budget)
    R = H // tH
    # Ensure the compiler's VMEM window covers what we are about to use, even on the
    # small-tile fallback path (never silently exceed it), staying below physical VMEM.
    vmem_limit = max(vmem_limit, min(6 * tH * bytes_per_raw_row + (2 << 20), cap * 9 // 10))

    # v7x has 2 TensorCores: if the (parallel) batch axis alone can't feed both, split
    # the row-tile axis into parallel chunks; per-chunk partials are summed in the wrapper.
    P = 2 if (N == 1 and R >= 2 and R % 2 == 0) else 1
    R_seq = R // P
    G = N * P

    if P == 1:
        def io_index(g, r):
            return (g, 0, r, 0)
    else:
        def io_index(g, r):
            return (g // P, 0, (g % P) * R_seq + r, 0)

    in_specs = [pl.BlockSpec((None, C, tH // k, W // k), io_index) for (k, _) in level_cfg]
    in_specs.append(pl.BlockSpec((None, C, tH, W), io_index))          # raw target tile
    args = list(outputs) + [target]
    for k, scale in level_cfg:
        if k > 1:
            # One-hot lane-pooling matrix with the 1/(k*k*scale) normalisation folded in.
            cols = jnp.arange(W, dtype=jnp.int32) // k
            b = (cols[:, None] == jnp.arange(W // k, dtype=jnp.int32)[None, :])
            args.append(b.astype(jnp.float32) / float(k * k * scale))
            in_specs.append(pl.BlockSpec((W, W // k), lambda g, r: (0, 0)))

    inv_elem = [1.0 / float(N * C * (H // k) * (W // k)) for (k, _) in level_cfg]
    inv_pix = [1.0 / float(N * (H // k) * (W // k)) for (k, _) in level_cfg]

    kernel = _make_fused_kernel(level_cfg, C, tH, W, inv_elem, inv_pix)

    out_shape = tuple(jax.ShapeDtypeStruct((G, 1, 1), jnp.float32) for _ in range(2 * L))
    out_specs = tuple(pl.BlockSpec((None, 1, 1), lambda g, r: (g, 0, 0)) for _ in range(2 * L))
    scratch_shapes = []
    for k, _ in level_cfg:
        scratch_shapes += [pltpu.VMEM((1, W // k), jnp.float32),
                           pltpu.VMEM((1, W // k), jnp.float32)]

    outs = pl.pallas_call(
        kernel,
        out_shape=out_shape,
        grid=(G, R_seq),
        in_specs=in_specs,
        out_specs=out_specs,
        scratch_shapes=scratch_shapes,
        compiler_params=pltpu.CompilerParams(
            dimension_semantics=("parallel", "arbitrary"),
            vmem_limit_bytes=int(vmem_limit)),
    )(*args)

    # Per-(batch, chunk) partials are already divided by the full mean denominators;
    # the final tiny reduction happens here in the wrapper.
    l1 = [jnp.sum(outs[2 * l]) for l in range(L)]
    epe = [jnp.sum(outs[2 * l + 1]) for l in range(L)]
    return l1, epe


# ============================ module wrapper ============================

class MultiScale:
    def __init__(self, startScale=5, numScales=6, l_weight=0.32, norm='L1',
                 tile_budget=None, vmem_limit=None):
        self.startScale = startScale
        self.numScales = numScales
        # kept for parity with the torch module; unused in forward (as in torch)
        self.loss_weights = jnp.array(
            [l_weight / 2 ** s for s in range(numScales)], jnp.float32)
        self.l_type = norm
        self.div_flow = 0.05
        assert self.loss_weights.shape[0] == self.numScales
        self.tile_budget = tile_budget
        self.vmem_limit = vmem_limit
        # [AvgPool2d(2**l, 2**l) for l in range(num_levels)][::-1][:output_level]
        pool_ks = [2 ** l for l in range(ConstV.num_levels)][::-1][:ConstV.output_level]
        # (pool kernel, post-pool divisor) per level; last level is the raw target.
        self.level_cfg = [(kk, 2 ** (ConstV.num_levels - l - 1))
                          for l, kk in enumerate(pool_ks)] + [(1, 1)]
        self.loss_labels = (['MultiScale-' + self.l_type, 'EPE'],)

    def __call__(self, outputs, target):
        l1_levels, epe_levels = multiscale_losses(
            outputs, target, self.level_cfg,
            tile_budget=self.tile_budget, vmem_limit=self.vmem_limit)
        loss = jnp.float32(0.0)
        epe = jnp.float32(0.0)
        loss_lvls, epe_lvls = [], []
        for w, l1_v, epe_v in zip(ConstV.weightsls, l1_levels, epe_levels):
            lvl = l1_v if self.l_type == 'L1' else epe_v    # L2 level loss == EPE
            loss = loss + jnp.float32(w) * lvl
            epe = epe + epe_v
            loss_lvls.append(lvl)
            epe_lvls.append(epe_v)
        return [loss, epe, loss_lvls, epe_lvls]


# ============================ pure-JAX reference ============================

def _ref_forward(outputs, target, norm='L1'):
    nl, ol = ConstV.num_levels, ConstV.output_level
    N, C, H, W = target.shape
    targets = []
    for l in range(ol):
        k = 2 ** (nl - 1 - l)
        t = target.reshape(N, C, H // k, k, W // k, k).mean(axis=(3, 5))
        targets.append(t / (2 ** (nl - l - 1)))
    targets.append(target)
    loss, epe, ll, el = jnp.float32(0.0), jnp.float32(0.0), [], []
    for w, o, t in zip(ConstV.weightsls, outputs, targets):
        l1 = jnp.mean(jnp.abs(o - t))
        e = jnp.mean(jnp.sqrt(jnp.sum((t - o) ** 2, axis=1)))
        lvl = l1 if norm == 'L1' else e
        loss = loss + w * lvl
        epe = epe + e
        ll.append(lvl)
        el.append(e)
    return loss, epe, ll, el


# ============================ main ============================

if __name__ == "__main__":
    key = jax.random.PRNGKey(0)
    N, C, H, W = 2, 2, 64, 64            # optical-flow tensors: 2 channels (u, v)
    n_out = ConstV.output_level + 1
    keys = jax.random.split(key, n_out + 1)
    target = jax.random.normal(keys[0], (N, C, H, W), jnp.float32)

    outputs = []
    for l in range(ConstV.output_level):
        k = 2 ** (ConstV.num_levels - 1 - l)
        outputs.append(jax.random.normal(keys[1 + l], (N, C, H // k, W // k), jnp.float32))
    outputs.append(jax.random.normal(keys[n_out], (N, C, H, W), jnp.float32))

    def check(res, ref):
        loss, epe, ll, el = res
        r_loss, r_epe, r_ll, r_el = ref
        assert jnp.allclose(loss, r_loss, atol=1e-5, rtol=1e-5), (loss, r_loss)
        assert jnp.allclose(epe, r_epe, atol=1e-5, rtol=1e-5), (epe, r_epe)
        for a, b in zip(ll, r_ll):
            assert jnp.allclose(a, b, atol=1e-5, rtol=1e-5), (a, b)
        for a, b in zip(el, r_el):
            assert jnp.allclose(a, b, atol=1e-5, rtol=1e-5), (a, b)

    ref = _ref_forward(outputs, target, norm='L1')

    # 1) single fused kernel, generation-aware auto tile budget (R == 1 at this size).
    module = MultiScale(norm='L1')
    res = jax.jit(module.__call__)(outputs, target)
    jax.block_until_ready(res[0])
    jax.block_until_ready(res[1])
    check(res, ref)

    # 2) tiny tile budget to exercise the multi-step accumulator / pipelined path (R > 1).
    module_tiled = MultiScale(norm='L1', tile_budget=16 * 1024)
    res2 = jax.jit(module_tiled.__call__)(outputs, target)
    jax.block_until_ready(res2[0])
    jax.block_until_ready(res2[1])
    check(res2, ref)

    # 3) N == 1 with the tiny budget exercises the v7x megacore row-chunk split (P == 2).
    outputs1 = [o[:1] for o in outputs]
    target1 = target[:1]
    ref1 = _ref_forward(outputs1, target1, norm='L1')
    res3 = jax.jit(module_tiled.__call__)(outputs1, target1)
    jax.block_until_ready(res3[0])
    jax.block_until_ready(res3[1])
    check(res3, ref1)

    print("KERNEL_OK")
</pallas_src>

<mosaic_0001>
module attributes {stable_mosaic.version = 11 : i64} {
  func.func @kernel(%arg0: i32, %arg1: i32, %arg2: memref<1x2x16x16xf32, #tpu.memory_space<vmem>>, %arg3: memref<1x2x32x32xf32, #tpu.memory_space<vmem>>, %arg4: memref<1x2x64x64xf32, #tpu.memory_space<vmem>>, %arg5: memref<1x2x64x64xf32, #tpu.memory_space<vmem>>, %arg6: memref<64x16xf32, #tpu.memory_space<vmem>>, %arg7: memref<64x32xf32, #tpu.memory_space<vmem>>, %arg8: memref<1x1x1xf32, #tpu.memory_space<vmem>>, %arg9: memref<1x1x1xf32, #tpu.memory_space<vmem>>, %arg10: memref<1x1x1xf32, #tpu.memory_space<vmem>>, %arg11: memref<1x1x1xf32, #tpu.memory_space<vmem>>, %arg12: memref<1x1x1xf32, #tpu.memory_space<vmem>>, %arg13: memref<1x1x1xf32, #tpu.memory_space<vmem>>, %arg14: memref<1x16xf32, #tpu.memory_space<vmem>>, %arg15: memref<1x16xf32, #tpu.memory_space<vmem>>, %arg16: memref<1x32xf32, #tpu.memory_space<vmem>>, %arg17: memref<1x32xf32, #tpu.memory_space<vmem>>, %arg18: memref<1x64xf32, #tpu.memory_space<vmem>>, %arg19: memref<1x64xf32, #tpu.memory_space<vmem>>) attributes {dimension_semantics = [#tpu.dimension_semantics<parallel>, #tpu.dimension_semantics<arbitrary>], iteration_bounds = array<i64: 2, 1>, scalar_prefetch = 0 : i64, scratch_operands = 6 : i64, tpu.core_type = #tpu.core_type<tc>, window_params = [{transform_indices = @transform_0, window_bounds = array<i64: 1, 2, 16, 16>}, {transform_indices = @transform_1, window_bounds = array<i64: 1, 2, 32, 32>}, {transform_indices = @transform_2, window_bounds = array<i64: 1, 2, 64, 64>}, {transform_indices = @transform_3, window_bounds = array<i64: 1, 2, 64, 64>}, {pipeline_mode = #tpu.pipeline_mode<synchronous>, transform_indices = @transform_4, window_bounds = array<i64: 64, 16>}, {pipeline_mode = #tpu.pipeline_mode<synchronous>, transform_indices = @transform_5, window_bounds = array<i64: 64, 32>}, {transform_indices = @transform_6, window_bounds = array<i64: 1, 1, 1>}, {transform_indices = @transform_7, window_bounds = array<i64: 1, 1, 1>}, {transform_indices = @transform_8, window_bounds = array<i64: 1, 1, 1>}, {transform_indices = @transform_9, window_bounds = array<i64: 1, 1, 1>}, {transform_indices = @transform_10, window_bounds = array<i64: 1, 1, 1>}, {transform_indices = @transform_11, window_bounds = array<i64: 1, 1, 1>}]} {
    %c0_i32 = arith.constant 0 : i32
    %0 = arith.cmpi eq, %arg1, %c0_i32 : i32
    %1 = arith.extui %0 : i1 to i32
    %c0_i32_0 = arith.constant 0 : i32
    %2 = arith.cmpi ne, %1, %c0_i32_0 : i32
    scf.if %2 {
      %cst_80 = arith.constant 0.000000e+00 : f32
      %86 = vector.broadcast %cst_80 : f32 to vector<1x16xf32>
      %c0_81 = arith.constant 0 : index
      %c0_82 = arith.constant 0 : index
      %87 = vector.load %arg14[%c0_81, %c0_82] : memref<1x16xf32, #tpu.memory_space<vmem>>, vector<1x16xf32>
      tpu.vector_store %arg14[%c0_81, %c0_82], %86 {strides = array<i32>} : memref<1x16xf32, #tpu.memory_space<vmem>>, vector<1x16xf32>,
      %cst_83 = arith.constant 0.000000e+00 : f32
      %88 = vector.broadcast %cst_83 : f32 to vector<1x16xf32>
      %c0_84 = arith.constant 0 : index
      %c0_85 = arith.constant 0 : index
      %89 = vector.load %arg15[%c0_84, %c0_85] : memref<1x16xf32, #tpu.memory_space<vmem>>, vector<1x16xf32>
      tpu.vector_store %arg15[%c0_84, %c0_85], %88 {strides = array<i32>} : memref<1x16xf32, #tpu.memory_space<vmem>>, vector<1x16xf32>,
      %cst_86 = arith.constant 0.000000e+00 : f32
      %90 = vector.broadcast %cst_86 : f32 to vector<1x32xf32>
      %c0_87 = arith.constant 0 : index
      %c0_88 = arith.constant 0 : index
      %91 = vector.load %arg16[%c0_87, %c0_88] : memref<1x32xf32, #tpu.memory_space<vmem>>, vector<1x32xf32>
      tpu.vector_store %arg16[%c0_87, %c0_88], %90 {strides = array<i32>} : memref<1x32xf32, #tpu.memory_space<vmem>>, vector<1x32xf32>,
      %cst_89 = arith.constant 0.000000e+00 : f32
      %92 = vector.broadcast %cst_89 : f32 to vector<1x32xf32>
      %c0_90 = arith.constant 0 : index
      %c0_91 = arith.constant 0 : index
      %93 = vector.load %arg17[%c0_90, %c0_91] : memref<1x32xf32, #tpu.memory_space<vmem>>, vector<1x32xf32>
      tpu.vector_store %arg17[%c0_90, %c0_91], %92 {strides = array<i32>} : memref<1x32xf32, #tpu.memory_space<vmem>>, vector<1x32xf32>,
      %cst_92 = arith.constant 0.000000e+00 : f32
      %94 = vector.broadcast %cst_92 : f32 to vector<1x64xf32>
      %c0_93 = arith.constant 0 : index
      %c0_94 = arith.constant 0 : index
      %95 = vector.load %arg18[%c0_93, %c0_94] : memref<1x64xf32, #tpu.memory_space<vmem>>, vector<1x64xf32>
      tpu.vector_store %arg18[%c0_93, %c0_94], %94 {strides = array<i32>} : memref<1x64xf32, #tpu.memory_space<vmem>>, vector<1x64xf32>,
      %cst_95 = arith.constant 0.000000e+00 : f32
      %96 = vector.broadcast %cst_95 : f32 to vector<1x64xf32>
      %c0_96 = arith.constant 0 : index
      %c0_97 = arith.constant 0 : index
      %97 = vector.load %arg19[%c0_96, %c0_97] : memref<1x64xf32, #tpu.memory_space<vmem>>, vector<1x64xf32>
      tpu.vector_store %arg19[%c0_96, %c0_97], %96 {strides = array<i32>} : memref<1x64xf32, #tpu.memory_space<vmem>>, vector<1x64xf32>,
    } else {
    }
    %c0 = arith.constant 0 : index
    %c0_1 = arith.constant 0 : index
    %c0_2 = arith.constant 0 : index
    %c0_3 = arith.constant 0 : index
    %3 = vector.load %arg2[%c0, %c0_1, %c0_2, %c0_3] : memref<1x2x16x16xf32, #tpu.memory_space<vmem>>, vector<1x2x16x16xf32>
    %4 = vector.shape_cast %3 : vector<1x2x16x16xf32> to vector<2x16x16xf32>
    %c0_4 = arith.constant 0 : index
    %c0_5 = arith.constant 0 : index
    %c0_6 = arith.constant 0 : index
    %c0_7 = arith.constant 0 : index
    %5 = tpu.strided_load %arg5[%c0_4, %c0_5, %c0_6, %c0_7] {strides = array<i32: 1, 1, 4, 1>} : memref<1x2x64x64xf32, #tpu.memory_space<vmem>>, vector<1x2x16x64xf32>
    %6 = vector.shape_cast %5 : vector<1x2x16x64xf32> to vector<2x16x64xf32>
    %c0_8 = arith.constant 0 : index
    %c0_9 = arith.constant 0 : index
    %c1 = arith.constant 1 : index
    %c0_10 = arith.constant 0 : index
    %7 = tpu.strided_load %arg5[%c0_8, %c0_9, %c1, %c0_10] {strides = array<i32: 1, 1, 4, 1>} : memref<1x2x64x64xf32, #tpu.memory_space<vmem>>, vector<1x2x16x64xf32>
    %8 = vector.shape_cast %7 : vector<1x2x16x64xf32> to vector<2x16x64xf32>
    %9 = arith.addf %6, %8 : vector<2x16x64xf32>
    %c0_11 = arith.constant 0 : index
    %c0_12 = arith.constant 0 : index
    %c2 = arith.constant 2 : index
    %c0_13 = arith.constant 0 : index
    %10 = tpu.strided_load %arg5[%c0_11, %c0_12, %c2, %c0_13] {strides = array<i32: 1, 1, 4, 1>} : memref<1x2x64x64xf32, #tpu.memory_space<vmem>>, vector<1x2x16x64xf32>
    %11 = vector.shape_cast %10 : vector<1x2x16x64xf32> to vector<2x16x64xf32>
    %12 = arith.addf %9, %11 : vector<2x16x64xf32>
    %c0_14 = arith.constant 0 : index
    %c0_15 = arith.constant 0 : index
    %c3 = arith.constant 3 : index
    %c0_16 = arith.constant 0 : index
    %13 = tpu.strided_load %arg5[%c0_14, %c0_15, %c3, %c0_16] {strides = array<i32: 1, 1, 4, 1>} : memref<1x2x64x64xf32, #tpu.memory_space<vmem>>, vector<1x2x16x64xf32>
    %14 = vector.shape_cast %13 : vector<1x2x16x64xf32> to vector<2x16x64xf32>
    %15 = arith.addf %12, %14 : vector<2x16x64xf32>
    %16 = vector.shape_cast %15 : vector<2x16x64xf32> to vector<32x64xf32>
    %c0_17 = arith.constant 0 : index
    %c0_18 = arith.constant 0 : index
    %17 = vector.load %arg6[%c0_17, %c0_18] : memref<64x16xf32, #tpu.memory_space<vmem>>, vector<64x16xf32>
    %cst = arith.constant dense<0.000000e+00> : vector<32x16xf32>
    %18 = tpu.matmul %16, %17, %cst {dimension_numbers = #tpu.dot_dimension_numbers<[1], [0], [0], [1], [0, 0, 1, 1], [], []>, precision = #tpu.contract_precision<fp32>} : vector<32x64xf32>, vector<64x16xf32>, vector<32x16xf32> -> vector<32x16xf32>
    %19 = vector.shape_cast %18 : vector<32x16xf32> to vector<2x16x16xf32>
    %20 = arith.subf %19, %4 : vector<2x16x16xf32>
    %21 = math.absf %20 : vector<2x16x16xf32>
    %cst_19 = arith.constant dense<0.000000e+00> : vector<16x16xf32>
    %22 = vector.multi_reduction <add>, %21, %cst_19 [0] : vector<2x16x16xf32> to vector<16x16xf32>
    %c0_20 = arith.constant 0 : index
    %c0_21 = arith.constant 0 : index
    %23 = vector.load %arg14[%c0_20, %c0_21] : memref<1x16xf32, #tpu.memory_space<vmem>>, vector<1x16xf32>
    %cst_22 = arith.constant dense<0.000000e+00> : vector<16xf32>
    %24 = vector.multi_reduction <add>, %22, %cst_22 [0] : vector<16x16xf32> to vector<16xf32>
    %25 = vector.shape_cast %24 : vector<16xf32> to vector<1x16xf32>
    %26 = arith.addf %23, %25 : vector<1x16xf32>
    %c0_23 = arith.constant 0 : index
    %c0_24 = arith.constant 0 : index
    %27 = vector.load %arg14[%c0_23, %c0_24] : memref<1x16xf32, #tpu.memory_space<vmem>>, vector<1x16xf32>
    tpu.vector_store %arg14[%c0_23, %c0_24], %26 {strides = array<i32>} : memref<1x16xf32, #tpu.memory_space<vmem>>, vector<1x16xf32>,
    %28 = arith.mulf %20, %20 : vector<2x16x16xf32>
    %cst_25 = arith.constant dense<0.000000e+00> : vector<16x16xf32>
    %29 = vector.multi_reduction <add>, %28, %cst_25 [0] : vector<2x16x16xf32> to vector<16x16xf32>
    %30 = math.sqrt %29 : vector<16x16xf32>
    %c0_26 = arith.constant 0 : index
    %c0_27 = arith.constant 0 : index
    %31 = vector.load %arg15[%c0_26, %c0_27] : memref<1x16xf32, #tpu.memory_space<vmem>>, vector<1x16xf32>
    %cst_28 = arith.constant dense<0.000000e+00> : vector<16xf32>
    %32 = vector.multi_reduction <add>, %30, %cst_28 [0] : vector<16x16xf32> to vector<16xf32>
    %33 = vector.shape_cast %32 : vector<16xf32> to vector<1x16xf32>
    %34 = arith.addf %31, %33 : vector<1x16xf32>
    %c0_29 = arith.constant 0 : index
    %c0_30 = arith.constant 0 : index
    %35 = vector.load %arg15[%c0_29, %c0_30] : memref<1x16xf32, #tpu.memory_space<vmem>>, vector<1x16xf32>
    tpu.vector_store %arg15[%c0_29, %c0_30], %34 {strides = array<i32>} : memref<1x16xf32, #tpu.memory_space<vmem>>, vector<1x16xf32>,
    %c0_31 = arith.constant 0 : index
    %c0_32 = arith.constant 0 : index
    %c0_33 = arith.constant 0 : index
    %c0_34 = arith.constant 0 : index
    %36 = vector.load %arg3[%c0_31, %c0_32, %c0_33, %c0_34] : memref<1x2x32x32xf32, #tpu.memory_space<vmem>>, vector<1x2x32x32xf32>
    %37 = vector.shape_cast %36 : vector<1x2x32x32xf32> to vector<2x32x32xf32>
    %c0_35 = arith.constant 0 : index
    %c0_36 = arith.constant 0 : index
    %c0_37 = arith.constant 0 : index
    %c0_38 = arith.constant 0 : index
    %38 = tpu.strided_load %arg5[%c0_35, %c0_36, %c0_37, %c0_38] {strides = array<i32: 1, 1, 2, 1>} : memref<1x2x64x64xf32, #tpu.memory_space<vmem>>, vector<1x2x32x64xf32>
    %39 = vector.shape_cast %38 : vector<1x2x32x64xf32> to vector<2x32x64xf32>
    %c0_39 = arith.constant 0 : index
    %c0_40 = arith.constant 0 : index
    %c1_41 = arith.constant 1 : index
    %c0_42 = arith.constant 0 : index
    %40 = tpu.strided_load %arg5[%c0_39, %c0_40, %c1_41, %c0_42] {strides = array<i32: 1, 1, 2, 1>} : memref<1x2x64x64xf32, #tpu.memory_space<vmem>>, vector<1x2x32x64xf32>
    %41 = vector.shape_cast %40 : vector<1x2x32x64xf32> to vector<2x32x64xf32>
    %42 = arith.addf %39, %41 : vector<2x32x64xf32>
    %43 = vector.shape_cast %42 : vector<2x32x64xf32> to vector<64x64xf32>
    %c0_43 = arith.constant 0 : index
    %c0_44 = arith.constant 0 : index
    %44 = vector.load %arg7[%c0_43, %c0_44] : memref<64x32xf32, #tpu.memory_space<vmem>>, vector<64x32xf32>
    %cst_45 = arith.constant dense<0.000000e+00> : vector<64x32xf32>
    %45 = tpu.matmul %43, %44, %cst_45 {dimension_numbers = #tpu.dot_dimension_numbers<[1], [0], [0], [1], [0, 0, 1, 1], [], []>, precision = #tpu.contract_precision<fp32>} : vector<64x64xf32>, vector<64x32xf32>, vector<64x32xf32> -> vector<64x32xf32>
    %46 = vector.shape_cast %45 : vector<64x32xf32> to vector<2x32x32xf32>
    %47 = arith.subf %46, %37 : vector<2x32x32xf32>
    %48 = math.absf %47 : vector<2x32x32xf32>
    %cst_46 = arith.constant dense<0.000000e+00> : vector<32x32xf32>
    %49 = vector.multi_reduction <add>, %48, %cst_46 [0] : vector<2x32x32xf32> to vector<32x32xf32>
    %c0_47 = arith.constant 0 : index
    %c0_48 = arith.constant 0 : index
    %50 = vector.load %arg16[%c0_47, %c0_48] : memref<1x32xf32, #tpu.memory_space<vmem>>, vector<1x32xf32>
    %cst_49 = arith.constant dense<0.000000e+00> : vector<32xf32>
    %51 = vector.multi_reduction <add>, %49, %cst_49 [0] : vector<32x32xf32> to vector<32xf32>
    %52 = vector.shape_cast %51 : vector<32xf32> to vector<1x32xf32>
    %53 = arith.addf %50, %52 : vector<1x32xf32>
    %c0_50 = arith.constant 0 : index
    %c0_51 = arith.constant 0 : index
    %54 = vector.load %arg16[%c0_50, %c0_51] : memref<1x32xf32, #tpu.memory_space<vmem>>, vector<1x32xf32>
    tpu.vector_store %arg16[%c0_50, %c0_51], %53 {strides = array<i32>} : memref<1x32xf32, #tpu.memory_space<vmem>>, vector<1x32xf32>,
    %55 = arith.mulf %47, %47 : vector<2x32x32xf32>
    %cst_52 = arith.constant dense<0.000000e+00> : vector<32x32xf32>
    %56 = vector.multi_reduction <add>, %55, %cst_52 [0] : vector<2x32x32xf32> to vector<32x32xf32>
    %57 = math.sqrt %56 : vector<32x32xf32>
    %c0_53 = arith.constant 0 : index
    %c0_54 = arith.constant 0 : index
    %58 = vector.load %arg17[%c0_53, %c0_54] : memref<1x32xf32, #tpu.memory_space<vmem>>, vector<1x32xf32>
    %cst_55 = arith.constant dense<0.000000e+00> : vector<32xf32>
    %59 = vector.multi_reduction <add>, %57, %cst_55 [0] : vector<32x32xf32> to vector<32xf32>
    %60 = vector.shape_cast %59 : vector<32xf32> to vector<1x32xf32>
    %61 = arith.addf %58, %60 : vector<1x32xf32>
    %c0_56 = arith.constant 0 : index
    %c0_57 = arith.constant 0 : index
    %62 = vector.load %arg17[%c0_56, %c0_57] : memref<1x32xf32, #tpu.memory_space<vmem>>, vector<1x32xf32>
    tpu.vector_store %arg17[%c0_56, %c0_57], %61 {strides = array<i32>} : memref<1x32xf32, #tpu.memory_space<vmem>>, vector<1x32xf32>,
    %c0_58 = arith.constant 0 : index
    %c0_59 = arith.constant 0 : index
    %c0_60 = arith.constant 0 : index
    %c0_61 = arith.constant 0 : index
    %63 = vector.load %arg4[%c0_58, %c0_59, %c0_60, %c0_61] : memref<1x2x64x64xf32, #tpu.memory_space<vmem>>, vector<1x2x64x64xf32>
    %64 = vector.shape_cast %63 : vector<1x2x64x64xf32> to vector<2x64x64xf32>
    %c0_62 = arith.constant 0 : index
    %c0_63 = arith.constant 0 : index
    %c0_64 = arith.constant 0 : index
    %c0_65 = arith.constant 0 : index
    %65 = vector.load %arg5[%c0_62, %c0_63, %c0_64, %c0_65] : memref<1x2x64x64xf32, #tpu.memory_space<vmem>>, vector<1x2x64x64xf32>
    %66 = vector.shape_cast %65 : vector<1x2x64x64xf32> to vector<2x64x64xf32>
    %67 = arith.subf %66, %64 : vector<2x64x64xf32>
    %68 = math.absf %67 : vector<2x64x64xf32>
    %cst_66 = arith.constant dense<0.000000e+00> : vector<64x64xf32>
    %69 = vector.multi_reduction <add>, %68, %cst_66 [0] : vector<2x64x64xf32> to vector<64x64xf32>
    %c0_67 = arith.constant 0 : index
    %c0_68 = arith.constant 0 : index
    %70 = vector.load %arg18[%c0_67, %c0_68] : memref<1x64xf32, #tpu.memory_space<vmem>>, vector<1x64xf32>
    %cst_69 = arith.constant dense<0.000000e+00> : vector<64xf32>
    %71 = vector.multi_reduction <add>, %69, %cst_69 [0] : vector<64x64xf32> to vector<64xf32>
    %72 = vector.shape_cast %71 : vector<64xf32> to vector<1x64xf32>
    %73 = arith.addf %70, %72 : vector<1x64xf32>
    %c0_70 = arith.constant 0 : index
    %c0_71 = arith.constant 0 : index
    %74 = vector.load %arg18[%c0_70, %c0_71] : memref<1x64xf32, #tpu.memory_space<vmem>>, vector<1x64xf32>
    tpu.vector_store %arg18[%c0_70, %c0_71], %73 {strides = array<i32>} : memref<1x64xf32, #tpu.memory_space<vmem>>, vector<1x64xf32>,
    %75 = arith.mulf %67, %67 : vector<2x64x64xf32>
    %cst_72 = arith.constant dense<0.000000e+00> : vector<64x64xf32>
    %76 = vector.multi_reduction <add>, %75, %cst_72 [0] : vector<2x64x64xf32> to vector<64x64xf32>
    %77 = math.sqrt %76 : vector<64x64xf32>
    %c0_73 = arith.constant 0 : index
    %c0_74 = arith.constant 0 : index
    %78 = vector.load %arg19[%c0_73, %c0_74] : memref<1x64xf32, #tpu.memory_space<vmem>>, vector<1x64xf32>
    %cst_75 = arith.constant dense<0.000000e+00> : vector<64xf32>
    %79 = vector.multi_reduction <add>, %77, %cst_75 [0] : vector<64x64xf32> to vector<64xf32>
    %80 = vector.shape_cast %79 : vector<64xf32> to vector<1x64xf32>
    %81 = arith.addf %78, %80 : vector<1x64xf32>
    %c0_76 = arith.constant 0 : index
    %c0_77 = arith.constant 0 : index
    %82 = vector.load %arg19[%c0_76, %c0_77] : memref<1x64xf32, #tpu.memory_space<vmem>>, vector<1x64xf32>
    tpu.vector_store %arg19[%c0_76, %c0_77], %81 {strides = array<i32>} : memref<1x64xf32, #tpu.memory_space<vmem>>, vector<1x64xf32>,
    %c0_i32_78 = arith.constant 0 : i32
    %83 = arith.cmpi eq, %arg1, %c0_i32_78 : i32
    %84 = arith.extui %83 : i1 to i32
    %c0_i32_79 = arith.constant 0 : i32
    %85 = arith.cmpi ne, %84, %c0_i32_79 : i32
    scf.if %85 {
      %c0_80 = arith.constant 0 : index
      %c0_81 = arith.constant 0 : index
      %86 = vector.load %arg14[%c0_80, %c0_81] : memref<1x16xf32, #tpu.memory_space<vmem>>, vector<1x16xf32>
      %cst_82 = arith.constant dense<0.000000e+00> : vector<1xf32>
      %87 = vector.multi_reduction <add>, %86, %cst_82 [1] : vector<1x16xf32> to vector<1xf32>
      %88 = vector.shape_cast %87 : vector<1xf32> to vector<1x1xf32>
      %c0_83 = arith.constant 0 : index
      %c0_84 = arith.constant 0 : index
      %89 = vector.load %arg15[%c0_83, %c0_84] : memref<1x16xf32, #tpu.memory_space<vmem>>, vector<1x16xf32>
      %cst_85 = arith.constant dense<0.000000e+00> : vector<1xf32>
      %90 = vector.multi_reduction <add>, %89, %cst_85 [1] : vector<1x16xf32> to vector<1xf32>
      %91 = vector.shape_cast %90 : vector<1xf32> to vector<1x1xf32>
      %cst_86 = arith.constant 9.765625E-4 : f32
      %92 = vector.broadcast %cst_86 : f32 to vector<1x1xf32>
      %93 = arith.mulf %88, %92 : vector<1x1xf32>
      %c0_87 = arith.constant 0 : index
      %c0_88 = arith.constant 0 : index
      %c0_89 = arith.constant 0 : index
      %94 = vector.load %arg8[%c0_87, %c0_88, %c0_89] : memref<1x1x1xf32, #tpu.memory_space<vmem>>, vector<1x1x1xf32>
      %95 = vector.shape_cast %94 : vector<1x1x1xf32> to vector<1x1xf32>
      %96 = vector.shape_cast %93 : vector<1x1xf32> to vector<1x1x1xf32>
      tpu.vector_store %arg8[%c0_87, %c0_88, %c0_89], %96 {strides = array<i32>} : memref<1x1x1xf32, #tpu.memory_space<vmem>>, vector<1x1x1xf32>,
      %cst_90 = arith.constant 0.001953125 : f32
      %97 = vector.broadcast %cst_90 : f32 to vector<1x1xf32>
      %98 = arith.mulf %91, %97 : vector<1x1xf32>
      %c0_91 = arith.constant 0 : index
      %c0_92 = arith.constant 0 : index
      %c0_93 = arith.constant 0 : index
      %99 = vector.load %arg9[%c0_91, %c0_92, %c0_93] : memref<1x1x1xf32, #tpu.memory_space<vmem>>, vector<1x1x1xf32>
      %100 = vector.shape_cast %99 : vector<1x1x1xf32> to vector<1x1xf32>
      %101 = vector.shape_cast %98 : vector<1x1xf32> to vector<1x1x1xf32>
      tpu.vector_store %arg9[%c0_91, %c0_92, %c0_93], %101 {strides = array<i32>} : memref<1x1x1xf32, #tpu.memory_space<vmem>>, vector<1x1x1xf32>,
      %c0_94 = arith.constant 0 : index
      %c0_95 = arith.constant 0 : index
      %102 = vector.load %arg16[%c0_94, %c0_95] : memref<1x32xf32, #tpu.memory_space<vmem>>, vector<1x32xf32>
      %cst_96 = arith.constant dense<0.000000e+00> : vector<1xf32>
      %103 = vector.multi_reduction <add>, %102, %cst_96 [1] : vector<1x32xf32> to vector<1xf32>
      %104 = vector.shape_cast %103 : vector<1xf32> to vector<1x1xf32>
      %c0_97 = arith.constant 0 : index
      %c0_98 = arith.constant 0 : index
      %105 = vector.load %arg17[%c0_97, %c0_98] : memref<1x32xf32, #tpu.memory_space<vmem>>, vector<1x32xf32>
      %cst_99 = arith.constant dense<0.000000e+00> : vector<1xf32>
      %106 = vector.multi_reduction <add>, %105, %cst_99 [1] : vector<1x32xf32> to vector<1xf32>
      %107 = vector.shape_cast %106 : vector<1xf32> to vector<1x1xf32>
      %cst_100 = arith.constant 2.44140625E-4 : f32
      %108 = vector.broadcast %cst_100 : f32 to vector<1x1xf32>
      %109 = arith.mulf %104, %108 : vector<1x1xf32>
      %c0_101 = arith.constant 0 : index
      %c0_102 = arith.constant 0 : index
      %c0_103 = arith.constant 0 : index
      %110 = vector.load %arg10[%c0_101, %c0_102, %c0_103] : memref<1x1x1xf32, #tpu.memory_space<vmem>>, vector<1x1x1xf32>
      %111 = vector.shape_cast %110 : vector<1x1x1xf32> to vector<1x1xf32>
      %112 = vector.shape_cast %109 : vector<1x1xf32> to vector<1x1x1xf32>
      tpu.vector_store %arg10[%c0_101, %c0_102, %c0_103], %112 {strides = array<i32>} : memref<1x1x1xf32, #tpu.memory_space<vmem>>, vector<1x1x1xf32>,
      %cst_104 = arith.constant 4.8828125E-4 : f32
      %113 = vector.broadcast %cst_104 : f32 to vector<1x1xf32>
      %114 = arith.mulf %107, %113 : vector<1x1xf32>
      %c0_105 = arith.constant 0 : index
      %c0_106 = arith.constant 0 : index
      %c0_107 = arith.constant 0 : index
      %115 = vector.load %arg11[%c0_105, %c0_106, %c0_107] : memref<1x1x1xf32, #tpu.memory_space<vmem>>, vector<1x1x1xf32>
      %116 = vector.shape_cast %115 : vector<1x1x1xf32> to vector<1x1xf32>
      %117 = vector.shape_cast %114 : vector<1x1xf32> to vector<1x1x1xf32>
      tpu.vector_store %arg11[%c0_105, %c0_106, %c0_107], %117 {strides = array<i32>} : memref<1x1x1xf32, #tpu.memory_space<vmem>>, vector<1x1x1xf32>,
      %c0_108 = arith.constant 0 : index
      %c0_109 = arith.constant 0 : index
      %118 = vector.load %arg18[%c0_108, %c0_109] : memref<1x64xf32, #tpu.memory_space<vmem>>, vector<1x64xf32>
      %cst_110 = arith.constant dense<0.000000e+00> : vector<1xf32>
      %119 = vector.multi_reduction <add>, %118, %cst_110 [1] : vector<1x64xf32> to vector<1xf32>
      %120 = vector.shape_cast %119 : vector<1xf32> to vector<1x1xf32>
      %c0_111 = arith.constant 0 : index
      %c0_112 = arith.constant 0 : index
      %121 = vector.load %arg19[%c0_111, %c0_112] : memref<1x64xf32, #tpu.memory_space<vmem>>, vector<1x64xf32>
      %cst_113 = arith.constant dense<0.000000e+00> : vector<1xf32>
      %122 = vector.multi_reduction <add>, %121, %cst_113 [1] : vector<1x64xf32> to vector<1xf32>
      %123 = vector.shape_cast %122 : vector<1xf32> to vector<1x1xf32>
      %cst_114 = arith.constant 6.10351563E-5 : f32
      %124 = vector.broadcast %cst_114 : f32 to vector<1x1xf32>
      %125 = arith.mulf %120, %124 : vector<1x1xf32>
      %c0_115 = arith.constant 0 : index
      %c0_116 = arith.constant 0 : index
      %c0_117 = arith.constant 0 : index
      %126 = vector.load %arg12[%c0_115, %c0_116, %c0_117] : memref<1x1x1xf32, #tpu.memory_space<vmem>>, vector<1x1x1xf32>
      %127 = vector.shape_cast %126 : vector<1x1x1xf32> to vector<1x1xf32>
      %128 = vector.shape_cast %125 : vector<1x1xf32> to vector<1x1x1xf32>
      tpu.vector_store %arg12[%c0_115, %c0_116, %c0_117], %128 {strides = array<i32>} : memref<1x1x1xf32, #tpu.memory_space<vmem>>, vector<1x1x1xf32>,
      %cst_118 = arith.constant 1.22070313E-4 : f32
      %129 = vector.broadcast %cst_118 : f32 to vector<1x1xf32>
      %130 = arith.mulf %123, %129 : vector<1x1xf32>
      %c0_119 = arith.constant 0 : index
      %c0_120 = arith.constant 0 : index
      %c0_121 = arith.constant 0 : index
      %131 = vector.load %arg13[%c0_119, %c0_120, %c0_121] : memref<1x1x1xf32, #tpu.memory_space<vmem>>, vector<1x1x1xf32>
      %132 = vector.shape_cast %131 : vector<1x1x1xf32> to vector<1x1xf32>
      %133 = vector.shape_cast %130 : vector<1x1xf32> to vector<1x1x1xf32>
      tpu.vector_store %arg13[%c0_119, %c0_120, %c0_121], %133 {strides = array<i32>} : memref<1x1x1xf32, #tpu.memory_space<vmem>>, vector<1x1x1xf32>,
    } else {
    }
    return
  }
  func.func @transform_0(%arg0: i32, %arg1: i32) -> (i32, i32, i32, i32) {
    %c0_i32 = arith.constant 0 : i32
    %c0_i32_0 = arith.constant 0 : i32
    %c0_i32_1 = arith.constant 0 : i32
    return %arg0, %c0_i32, %arg1, %c0_i32_0 : i32, i32, i32, i32
  }
  func.func @transform_1(%arg0: i32, %arg1: i32) -> (i32, i32, i32, i32) {
    %c0_i32 = arith.constant 0 : i32
    %c0_i32_0 = arith.constant 0 : i32
    %c0_i32_1 = arith.constant 0 : i32
    return %arg0, %c0_i32, %arg1, %c0_i32_0 : i32, i32, i32, i32
  }
  func.func @transform_2(%arg0: i32, %arg1: i32) -> (i32, i32, i32, i32) {
    %c0_i32 = arith.constant 0 : i32
    %c0_i32_0 = arith.constant 0 : i32
    %c0_i32_1 = arith.constant 0 : i32
    return %arg0, %c0_i32, %arg1, %c0_i32_0 : i32, i32, i32, i32
  }
  func.func @transform_3(%arg0: i32, %arg1: i32) -> (i32, i32, i32, i32) {
    %c0_i32 = arith.constant 0 : i32
    %c0_i32_0 = arith.constant 0 : i32
    %c0_i32_1 = arith.constant 0 : i32
    return %arg0, %c0_i32, %arg1, %c0_i32_0 : i32, i32, i32, i32
  }
  func.func @transform_4(%arg0: i32, %arg1: i32) -> (i32, i32) {
    %c0_i32 = arith.constant 0 : i32
    %c0_i32_0 = arith.constant 0 : i32
    %c0_i32_1 = arith.constant 0 : i32
    return %c0_i32, %c0_i32_0 : i32, i32
  }
  func.func @transform_5(%arg0: i32, %arg1: i32) -> (i32, i32) {
    %c0_i32 = arith.constant 0 : i32
    %c0_i32_0 = arith.constant 0 : i32
    %c0_i32_1 = arith.constant 0 : i32
    return %c0_i32, %c0_i32_0 : i32, i32
  }
  func.func @transform_6(%arg0: i32, %arg1: i32) -> (i32, i32, i32) {
    %c0_i32 = arith.constant 0 : i32
    %c0_i32_0 = arith.constant 0 : i32
    %c0_i32_1 = arith.constant 0 : i32
    return %arg0, %c0_i32, %c0_i32_0 : i32, i32, i32
  }
  func.func @transform_7(%arg0: i32, %arg1: i32) -> (i32, i32, i32) {
    %c0_i32 = arith.constant 0 : i32
    %c0_i32_0 = arith.constant 0 : i32
    %c0_i32_1 = arith.constant 0 : i32
    return %arg0, %c0_i32, %c0_i32_0 : i32, i32, i32
  }
  func.func @transform_8(%arg0: i32, %arg1: i32) -> (i32, i32, i32) {
    %c0_i32 = arith.constant 0 : i32
    %c0_i32_0 = arith.constant 0 : i32
    %c0_i32_1 = arith.constant 0 : i32
    return %arg0, %c0_i32, %c0_i32_0 : i32, i32, i32
  }
  func.func @transform_9(%arg0: i32, %arg1: i32) -> (i32, i32, i32) {
    %c0_i32 = arith.constant 0 : i32
    %c0_i32_0 = arith.constant 0 : i32
    %c0_i32_1 = arith.constant 0 : i32
    return %arg0, %c0_i32, %c0_i32_0 : i32, i32, i32
  }
  func.func @transform_10(%arg0: i32, %arg1: i32) -> (i32, i32, i32) {
    %c0_i32 = arith.constant 0 : i32
    %c0_i32_0 = arith.constant 0 : i32
    %c0_i32_1 = arith.constant 0 : i32
    return %arg0, %c0_i32, %c0_i32_0 : i32, i32, i32
  }
  func.func @transform_11(%arg0: i32, %arg1: i32) -> (i32, i32, i32) {
    %c0_i32 = arith.constant 0 : i32
    %c0_i32_0 = arith.constant 0 : i32
    %c0_i32_1 = arith.constant 0 : i32
    return %arg0, %c0_i32, %c0_i32_0 : i32, i32, i32
  }
}

</mosaic_0001>

<bundles_post_ra>
// kernel: a_call__.1
= control target key start
LH: loop header
LB: loop body
LE: loop exit
PB: predicated region body
PF: predicated region fallthrough
CT: control target
= control target key end

     0   :  { %s5281_s0 = inlined_call_operand.hbm [shape: f32[2,2,16,16], index: 0, kind: input, shape index: {}]   ;;  %s5282_s1 = inlined_call_operand.vmem [shape: f32[2,2,32,32], index: 1, kind: input, shape index: {}]   ;;  %s5283_s2 = inlined_call_operand.hbm [shape: f32[2,2,64,64], index: 2, kind: input, shape index: {}]   ;;  %s5284_s3 = inlined_call_operand.hbm [shape: f32[2,2,64,64], index: 3, kind: input, shape index: {}]   ;;  %s5285_s4 = inlined_call_operand.vmem [shape: f32[64,16], index: 4, kind: input, shape index: {}]   ;;  %s5286_s5 = inlined_call_operand.vmem [shape: f32[64,32], index: 5, kind: input, shape index: {}]   ;;  %s5287_s6 = inlined_call_operand.vmem [shape: f32[2,1,1], index: 6, kind: output, shape index: {0}]   ;;  %s5288_s7 = inlined_call_operand.vmem [shape: f32[2,1,1], index: 7, kind: output, shape index: {1}]   ;;  %s5289_s8 = inlined_call_operand.vmem [shape: f32[2,1,1], index: 8, kind: output, shape index: {2}]   ;;  %s5290_s9 = inlined_call_operand.vmem [shape: f32[2,1,1], index: 9, kind: output, shape index: {3}]   ;;  %s5291_s10 = inlined_call_operand.vmem [shape: f32[2,1,1], index: 10, kind: output, shape index: {4}]   ;;  %s5292_s11 = inlined_call_operand.vmem [shape: f32[2,1,1], index: 11, kind: output, shape index: {5}]  }
   0x1   :  { %5334 = sst [smem:[#allocation20_spill]] %s5283_s2 }
   0x2   :  { %5335 = sst [smem:[#allocation21_spill]] %s5290_s9 }
   0x3   :  { %5336 = sst [smem:[#allocation22_spill]] %s5292_s11 }
   0x4   :  { %17 = vsyncpa [#allocation9], 0 }
   0x5   :  { %19 = vsyncpa [#allocation9 + $0x1], 0 }
   0x6   :  { %20 = vsyncpa [#allocation11], 0 }
   0x7   :  { %22 = vsyncpa [#allocation11 + $0x1], 0  ;;  %s4033_s17 = smov 0   ;;  %s4035_s18 = smov 0  }
   0x8   :  { %s4037_s19 = smov 0   ;;  %s4039_s20 = smov 0  }
   0x9   :  { %s4041_s21 = smov 0   ;;  %s4043_s22 = smov 0  }
   0xa LB: > { %5337 = sst [smem:[#allocation15_spill]] %s3953_s19  ;;  %s5293_s23 = sadd.s32 4294967295, %s3965_s22   ;;  %s3965_s22 = sphi %s4043_s22, %s28_s22   ;;  %s3961_s21 = sphi %s4041_s21, %s5388_s21   ;;  %s3957_s20 = sphi %s4039_s20, %s5387_s20   ;;  %s3953_s19 = sphi %s4037_s19, %s5386_s19   ;;  %s3949_s18 = sphi %s4035_s18, %s5390_s18   ;;  %s3945_s17 = sphi %s4033_s17, %s5389_s17  }
   0xb   : > { %5338 = sst [smem:[#allocation16_spill]] %s3961_s21  ;;  %s40_s24 = sadd.s32 1, %s3961_s21 }
   0xc   : > { %p42_p0 = scmp.ge.s32.totalorder %s40_s24, 2  ;;  %s49_s25 = sadd.s32 1, %s3953_s19 }
   0xd   : > { %p56_p1 = scmp.ne.s32.totalorder %s3953_s19, %s3949_s18  ;;  %p57_p2 = scmp.eq.s32.totalorder %s3965_s22, 0 }
   0xe   : > { %s5392_s24 = smov (%p42_p0, %s40_s24), 0  ;;  %p62_p4 = scmp.ne.s32.totalorder %s3949_s18, %s3945_s17 }
   0xf   : > { %5339 = sst [smem:[#allocation17_spill]] %s5392_s24  ;;  %p58_p3 = por %p57_p2, %p56_p1 }
  0x10   : > { %s44_s26 = ssub.s32 %s3961_s21, %s5392_s24  ;;  %p63_p5 = scmp.eq.s32.totalorder %s5293_s23, 0 }
  0x11   : > { %p47_p6 = scmp.eq.s32.totalorder %s44_s26, 0  ;;  %p3741_p8 = scmp.lt.s32.totalorder %s3965_s22, 2 }
  0x12   : > { %p4074_p7 = por %p63_p5, %p62_p4  ;;  %s4083_s29 = sand.u32 1, %s3953_s19  }
  0x13   : > { %s4080_s28 = scalar_select %p47_p6, %s3953_s19, %s49_s25  }
  0x14   : > { %s5340_s27 = scalar_select %p4074_p7, 1, 0 }
  0x15   : > { %5341 = sst [smem:[#allocation18_spill]] %s4080_s28  ;;  %p4085_p9 = pnand %p3741_p8, %p58_p3 }
  0x16   : > { %s410_s12 = sand.u32 1, %s3965_s22   ;;  %s5295_s13 = sshll.u32 %s4083_s29, 7 }
  0x17   : > { %s5296_s14 = sshll.u32 %s3961_s21, 11  ;;  %s5343_s2 = sld [smem:[#allocation20_spill]] }
  0x18   : > { %s414_s25 = scalar_lea.vmem [#allocation10], %s5295_s13  ;;  %s4103_s23 = scalar_lea.sflag [#allocation11], %s410_s12 }
  0x19   : > { %s423_s26 = sshll.u32 %s414_s25, 4  ;;  %p4109_p11 = pneg %p4085_p9  ;;  %s4101_s26 = int_to_ptr.vmem [resolvable:$true] %s423_s26 }
  0x1d   : > { %s4097_s17 = scalar_lea.hbm %s5343_s2, %s5296_s14  ;;  %s3826_s13 = scalar_lea.hbm %s5343_s2, 4096 }
  0x1e   : > { %s3821_s24 = scalar_lea.hbm %s4097_s17, 2048  ;;  %p3827_p0 = scmp.lt.u32.totalorder %s4097_s17, %s5343_s2 }
  0x1f   : > { %p3822_p10 = scmp.ne.s32.totalorder %s4097_s17, %s3821_s24  ;;  %p3828_p1 = scmp.lt.u32.totalorder %s3826_s13, %s3821_s24 }
  0x20   : > { %p3830_p3 = scmp.lt.u32.totalorder %s3821_s24, %s4097_s17 }
  0x21   : > { %p3824_p12 = pnand %p4109_p11, %p3822_p10  ;;  %p3829_p2 = por %p3828_p1, %p3827_p0 }
  0x23   : > { %p3825_p13 = pneg %p3824_p12  ;;  %p3831_p4 = por %p3830_p3, %p3829_p2 }
  0x25   : > { %p3832_p5 = pnand %p3831_p4, %p3825_p13 }
  0x27   : > { %3835 = shalt.err (!%p3832_p5)
}
  0x28   : > { %s3836_s12 = scalar_lea.vmem %s4101_s26, 2048  ;;  %s3967_s15 = smov [#allocation10]  }
  0x29   : > { %p3837_p6 = scmp.ne.s32.totalorder %s4101_s26, %s3836_s12  ;;  %s3841_s16 = sshll.u32 %s3967_s15, 4  ;;  %s3842_s16 = int_to_ptr.vmem [resolvable:$false] %s3841_s16 }
  0x2a   : > { %s3843_s14 = scalar_lea.vmem %s3842_s16, 4096  ;;  %p3844_p12 = scmp.lt.s32.totalorder %s4101_s26, %s3842_s16 }
  0x2b   : > { %p3839_p8 = pnand %p3837_p6, %p4109_p11  ;;  %p3845_p7 = scmp.lt.s32.totalorder %s3843_s14, %s3836_s12 }
  0x2d   : > { %p3840_p10 = pneg %p3839_p8  ;;  %p3846_p0 = por %p3845_p7, %p3844_p12 }
  0x2f   : > { %p3847_p1 = pnand %p3846_p0, %p3840_p10 }
  0x31   : > { %3850 = shalt.err (!%p3847_p1)
}
  0x32   : > { %s5299_s24 = smov 128   ;;  %s5301_s13 = smov 8  }
  0x33   : > { %3737 = dma.hbm_to_vmem [thread:$0]  (!%p4085_p9), %s4097_s17, 2048, %s4101_s26, %s4103_s23, %s5299_s24, %s5299_s24, %s5301_s13  }
  0x34   : > { %s5345_s25 = sshll.u32 %s3961_s21, 11  ;;  %s5346_s14 = sshll.u32 %s4083_s29, 7 }
  0x35   : > { %s4141_s16 = scalar_lea.hbm %s5284_s3, %s5345_s25  ;;  %s437_s2 = scalar_lea.vmem [#allocation12], %s5346_s14 }
  0x36   : > { %s446_s19 = sshll.u32 %s437_s2, 4  ;;  %p2963_p7 = scmp.ge.s32.totalorder %s3965_s22, 1  ;;  %s4145_s19 = int_to_ptr.vmem [resolvable:$true] %s446_s19 }
  0x37   : > { %p454_p13 = scmp.lt.s32.totalorder %s3965_s22, 3  ;;  %s2954_s9 = sshll.u32 %s4083_s29, 5 }
  0x38   : > { %s3001_s17 = sshll.u32 %s3961_s21, 9  ;;  %s378_s2 = scalar_lea.vmem [#allocation8], %s2954_s9 }
  0x39   : > { %p4149_p2 = pnand %p2963_p7, %p454_p13  ;;  %s4158_s12 = scalar_lea.hbm %s5281_s0, %s3001_s17 }
  0x3a   : > { %s387_s25 = sshll.u32 %s378_s2, 4  ;;  %s375_s15 = scalar_lea.sflag [#allocation9], %s4083_s29  ;;  %s4160_s25 = int_to_ptr.vmem [resolvable:$true] %s387_s25 }
  0x3b   : > { %s5347_s11 = scalar_select %p4149_p2, 1, 0 }
  0x3c   : > { %s3851_s14 = scalar_lea.hbm %s4158_s12, 512  ;;  %s3856_s24 = scalar_lea.hbm %s5281_s0, 1024 }
  0x3d   : > { %p3852_p3 = scmp.ne.s32.totalorder %s4158_s12, %s3851_s14  ;;  %p3857_p6 = scmp.lt.u32.totalorder %s4158_s12, %s5281_s0 }
  0x3e   : > { %p3858_p8 = scmp.lt.u32.totalorder %s3856_s24, %s3851_s14  ;;  %p3860_p12 = scmp.lt.u32.totalorder %s3851_s14, %s4158_s12 }
  0x3f   : > { %p3854_p4 = pnand %p3852_p3, %p4109_p11 }
  0x40   : > { %p3859_p10 = por %p3858_p8, %p3857_p6 }
  0x41   : > { %p3855_p5 = pneg %p3854_p4 }
  0x42   : > { %p3861_p0 = por %p3860_p12, %p3859_p10 }
  0x44   : > { %p3862_p1 = pnand %p3861_p0, %p3855_p5 }
  0x46   : > { %3865 = shalt.err (!%p3862_p1)
}
  0x47   : > { %s3866_s9 = scalar_lea.vmem %s4160_s25, 512  ;;  %s3970_s21 = smov [#allocation8]  }
  0x48   : > { %p3867_p7 = scmp.ne.s32.totalorder %s4160_s25, %s3866_s9  ;;  %s3871_s13 = sshll.u32 %s3970_s21, 4  ;;  %s3872_s13 = int_to_ptr.vmem [resolvable:$false] %s3871_s13 }
  0x49   : > { %s3873_s2 = scalar_lea.vmem %s3872_s13, 1024  ;;  %p3874_p4 = scmp.lt.s32.totalorder %s4160_s25, %s3872_s13 }
  0x4a   : > { %p3869_p13 = pnand %p3867_p7, %p4109_p11  ;;  %p3875_p2 = scmp.lt.s32.totalorder %s3873_s2, %s3866_s9 }
  0x4c   : > { %p3870_p3 = pneg %p3869_p13  ;;  %p3876_p6 = por %p3875_p2, %p3874_p4 }
  0x4e   : > { %p3877_p8 = pnand %p3876_p6, %p3870_p3 }
  0x50   : > { %3880 = shalt.err (!%p3877_p8)
}
  0x51   : > { %s5348_s14 = smov 8   ;;  %s5349_s24 = smov 128  }
  0x52   : > { %3734 = dma.hbm_to_vmem [thread:$0]  (!%p4085_p9), %s4158_s12, 512, %s4160_s25, %s375_s15, %s5349_s24, %s5349_s24, %s5348_s14  }
  0x53   : > { %s3881_s17 = scalar_lea.hbm %s4141_s16, 2048  ;;  %s3886_s21 = scalar_lea.hbm %s5284_s3, 4096 }
  0x54   : > { %p3882_p5 = scmp.ne.s32.totalorder %s4141_s16, %s3881_s17  ;;  %p3887_p12 = scmp.lt.u32.totalorder %s4141_s16, %s5284_s3 }
  0x55   : > { %p3888_p0 = scmp.lt.u32.totalorder %s3886_s21, %s3881_s17  ;;  %p3890_p7 = scmp.lt.u32.totalorder %s3881_s17, %s4141_s16 }
  0x56   : > { %p3884_p2 = pnand %p3882_p5, %p4109_p11 }
  0x57   : > { %p3889_p1 = por %p3888_p0, %p3887_p12 }
  0x58   : > { %p3885_p10 = pneg %p3884_p2 }
  0x59   : > { %p3891_p13 = por %p3890_p7, %p3889_p1 }
  0x5b   : > { %p3892_p3 = pnand %p3891_p13, %p3885_p10 }
  0x5d   : > { %3895 = shalt.err (!%p3892_p3)
}
  0x5e   : > { %s3896_s29 = scalar_lea.vmem %s4145_s19, 2048  ;;  %s3971_s12 = smov [#allocation12]  }
  0x5f   : > { %p3897_p4 = scmp.ne.s32.totalorder %s4145_s19, %s3896_s29  ;;  %s3901_s25 = sshll.u32 %s3971_s12, 4  ;;  %s3902_s25 = int_to_ptr.vmem [resolvable:$false] %s3901_s25 }
  0x60   : > { %s3903_s15 = scalar_lea.vmem %s3902_s25, 4096  ;;  %p3904_p5 = scmp.lt.s32.totalorder %s4145_s19, %s3902_s25 }
  0x61   : > { %p3899_p6 = pnand %p3897_p4, %p4109_p11  ;;  %p3905_p2 = scmp.lt.s32.totalorder %s3903_s15, %s3896_s29 }
  0x63   : > { %p3900_p8 = pneg %p3899_p6  ;;  %p3906_p12 = por %p3905_p2, %p3904_p5 }
  0x65   : > { %p3907_p0 = pnand %p3906_p12, %p3900_p8 }
  0x67   : > { %3910 = shalt.err (!%p3907_p0)
}
  0x68   : > { %3740 = dma.hbm_to_vmem [thread:$0]  (!%p4085_p9), %s4141_s16, 2048, %s4145_s19, %s4103_s23, %s5349_s24, %s5349_s24, %s5348_s14  }
  0x69   : > { %p5350_p11 = scmp.ne.s32.totalorder %s5347_s11, 0 }
  0x6b   : > { %458 = sbr.rel (%p5350_p11) target bundleno = 676 (0x2a4), region = 44 }
  0x72   : > { %s4217_s28 = sand.u32 1, %s3949_s18   ;;  %p5351_p10 = scmp.ne.s32.totalorder %s5340_s27, 0 }
  0x73   : > { %s2964_s17 = sshll.u32 %s4217_s28, 5  ;;  %s461_s26 = scalar_lea.sflag [#allocation9], %s4217_s28 }
  0x74   : > { %s4221_s9 = scalar_lea.vmem [#allocation8], %s2964_s17 }
  0x75   : > { %3936 = dma.done.wait (%p5351_p10), %s461_s26, 512  }
  0x76   : > { %3938 = vsyncadd (%p5351_p10), %s461_s26, 4294966784  ;;  %s5352_s19 = sadd.s32 4294967295, %s3965_s22   ;;  %s2965_s23 = sshll.u32 %s4217_s28, 7 }
  0x77   : > { %s469_s11 = sand.u32 1, %s5352_s19   ;;  %s4232_s16 = scalar_lea.vmem [#allocation10], %s2965_s23 }
  0x78   : > { %s470_s30 = scalar_lea.sflag [#allocation11], %s469_s11 }
  0x79   : > { %3940 = dma.done.wait (%p5351_p10), %s470_s30, 4096  }
  0x7a   : > { %3942 = vsyncadd (%p5351_p10), %s470_s30, 4294963200  ;;  %v644_v0 = vld [vmem:[%s5285_s4] sm:$0xff]  ;;  %v645_v1 = vld [vmem:[%s5285_s4 + $0x8] sm:$0xff]  ;;  %vm652_vm0 = vcmask 523264   ;;  %s4339_s21 = scalar_lea.vmem [#allocation12], %s2965_s23  ;;  %vm588_vm1 = vcmask 122880  }
  0x7b   : > { %v1435_v2 = vld [vmem:[%s5286_s5] sm:$0xff]  ;;  %v666_v3 = vand.u32 4294901760, %v644_v0  ;;  %v669_v4 = vand.u32 4294901760, %v645_v1  ;;  %v1436_v5 = vld [vmem:[%s5286_s5 + $0x8] sm:$0xff]  ;;  %v4253_v7 = vld [vmem:[%s5285_s4 + $0x10] sm:$0xff]  ;;  %vm591_vm2 = vcmask 253952  }
  0x7c   : > { %v1468_v6 = vand.u32 4294901760, %v1435_v2  ;;  %v4258_v8 = vld [vmem:[%s5285_s4 + $0x18] sm:$0xff]  ;;  %v1471_v9 = vand.u32 4294901760, %v1436_v5  ;;  %v672_v10 = vand.u32 4294901760, %v4253_v7  ;;  %v4265_v12 = vld [vmem:[%s5286_s5 + $0x10] sm:$0xff]  ;;  %v4275_v14 = vld [vmem:[%s5285_s4 + $0x20] sm:$0xff] }
  0x7d   : > { %v675_v11 = vand.u32 4294901760, %v4258_v8  ;;  %v4270_v13 = vld [vmem:[%s5286_s5 + $0x18] sm:$0xff]  ;;  %v4277_v15 = vpack.c.bf16 %v669_v4, %v666_v3  ;;  %v1474_v16 = vand.u32 4294901760, %v4265_v12  ;;  %v4284_v18 = vld [vmem:[%s5285_s4 + $0x28] sm:$0xff]  ;;  %v678_v19 = vand.u32 4294901760, %v4275_v14  ;;  %v4290_v20 = vld [vmem:[%s5286_s5 + $0x20] sm:$0xff] }
  0x7e   : > { %v1477_v17 = vand.u32 4294901760, %v4270_v13  ;;  %v4295_v21 = vld [vmem:[%s5286_s5 + $0x28] sm:$0xff]  ;;  %v4297_v22 = vpack.c.bf16 %v1471_v9, %v1468_v6  ;;  %v681_v24 = vand.u32 4294901760, %v4284_v18  ;;  %v1480_v25 = vand.u32 4294901760, %v4290_v20  ;;  %v4310_v26 = vld [vmem:[%s5285_s4 + $0x30] sm:$0xff]  ;;  %v4315_v27 = vld [vmem:[%s5285_s4 + $0x38] sm:$0xff] }
  0x7f   : > { %v4303_v23 = vpack.c.bf16 %v675_v11, %v672_v10  ;;  %v4320_v28 = vld [vmem:[%s5286_s5 + $0x30] sm:$0xff]  ;;  %3474 = vmatprep.subr.bf16.mxu0 %v4277_v15  ;;  %v1483_v30 = vand.u32 4294901760, %v4295_v21  ;;  %v684_v31 = vand.u32 4294901760, %v4310_v26  ;;  %v5323_v32 = vand.u32 4294901760, %v4315_v27  ;;  %v4335_v33 = vld [vmem:[%s5286_s5 + $0x38] sm:$0xff]  ;;  %p555_p9 = scmp.lt.s32.totalorder %s3957_s20, 1 }
  0x80   : > { %v4327_v29 = vpack.c.bf16 %v1477_v17, %v1474_v16  ;;  %v1403_v34 = vld [vmem:[%s4339_s21] ss:$2 sm:$0xff]  ;;  %3570 = vmatprep.subr.bf16.mxu1 %v4297_v22  ;;  %3476 = vmatpush3.bf16.msra.mxu0 %v4277_v15  ;;  %v4348_v35 = vpack.c.bf16 %v681_v24, %v678_v19  ;;  %v5322_v36 = vand.u32 4294901760, %v4320_v28  ;;  %v5320_v37 = vand.u32 4294901760, %v4335_v33  ;;  %v2991_v38 = vld [vmem:[%s4339_s21 + $0x1] ss:$2 sm:$0xff] }
  0x81   : > { %v601_v39 = vld [vmem:[%s4339_s21] ss:$4 sm:$0xff]  ;;  %v4354_v40 = vsub.f32 %v644_v0, %v666_v3  ;;  %3572 = vmatpush3.bf16.msra.mxu1 %v4297_v22  ;;  %3478 = vmatprep.subr.bf16.mxu0 %v4303_v23  ;;  %v4362_v41 = vpack.c.bf16 %v1483_v30, %v1480_v25  ;;  %v4368_v42 = vpack.c.bf16 %v5323_v32, %v684_v31  ;;  %v2972_v44 = vld [vmem:[%s4339_s21 + $0x1] ss:$4 sm:$0xff]  ;;  %v2976_v45 = vld [vmem:[%s4339_s21 + $0x2] ss:$4 sm:$0xff] }
  0x82   : > { %v1427_v43 = vadd.f32 %v2991_v38, %v1403_v34  ;;  %v2980_v46 = vld [vmem:[%s4339_s21 + $0x3] ss:$4 sm:$0xff]  ;;  %3574 = vmatprep.subr.bf16.mxu1 %v4327_v29  ;;  %v4378_v47 = vpack.c.bf16 %v5320_v37, %v5322_v36  ;;  %v616_v48 = vadd.f32 %v2972_v44, %v601_v39  ;;  %v4381_v50 = vsub.f32 %v645_v1, %v669_v4  ;;  %v2984_v51 = vld [vmem:[%s4339_s21 + $0x10] ss:$2 sm:$0xff]  ;;  %v2973_v58 = vld [vmem:[%s4339_s21 + $0x21] ss:$4 sm:$0xff] }
  0x83   : > { %5353 = vst [vmem:[#allocation19_spill] sm:$0xff] %v4368_v42  ;;  %v5313_v49 = vand.u32 4294901760, %v4354_v40  ;;  %v2992_v52 = vld [vmem:[%s4339_s21 + $0x11] ss:$2 sm:$0xff]  ;;  %v4386_v55 = vsub.f32 %v1435_v2, %v1468_v6  ;;  %v4388_v56 = vsub.f32 %v1436_v5, %v1471_v9  ;;  %v2969_v57 = vld [vmem:[%s4339_s21 + $0x20] ss:$4 sm:$0xff] }
  0x84   : > { %v1444_v53 = vsel %vm652_vm0, %v1427_v43, 0  ;;  %v1428_v54 = vadd.f32 %v2992_v52, %v2984_v51  ;;  %3480 = vmatpush3.bf16.msra.mxu0 %v4303_v23  ;;  %v628_v60 = vadd.f32 %v2976_v45, %v616_v48  ;;  %v5312_v62 = vand.u32 4294901760, %v4381_v50  ;;  %v2977_v63 = vld [vmem:[%s4339_s21 + $0x22] ss:$4 sm:$0xff]  ;;  %v2993_v38 = vld [vmem:[%s4339_s21 + $0x21] ss:$2 sm:$0xff] }
  0x85   : > { %v4393_v59 = vand.u32 4294901760, %v1444_v53  ;;  %v782_v61 = vsub.f32 %v4354_v40, %v5313_v49  ;;  %3576 = vmatpush3.bf16.msra.mxu1 %v4327_v29  ;;  %3482 = vmatprep.subr.bf16.mxu0 %v4348_v35  ;;  %v5311_v1 = vand.u32 4294901760, %v4386_v55  ;;  %v5304_v2 = vand.u32 4294901760, %v4388_v56  ;;  %v2985_v4 = vld [vmem:[%s4339_s21 + $0x20] ss:$2 sm:$0xff]  ;;  %s5394_s20 = smov (!%p555_p9, %s3957_s20), 1 }
  0x86   : > { %v1447_v0 = vsel %vm652_vm0, %v1428_v54, 0  ;;  %v617_v3 = vadd.f32 %v2973_v58, %v2969_v57  ;;  %3578 = vmatprep.subr.bf16.mxu1 %v4362_v41  ;;  %v640_v6 = vadd.f32 %v2980_v46, %v628_v60  ;;  %v789_v34 = vsub.f32 %v4381_v50, %v5312_v62  ;;  %v2981_v48 = vld [vmem:[%s4339_s21 + $0x23] ss:$4 sm:$0xff]  ;;  %s3004_s28 = sshll.u32 %s5394_s20, 6  ;;  %s568_s29 = scalar_lea.vmem %s5287_s6, %s5394_s20 }
  0x87   : > { %v4408_v5 = vsub.f32 %v1444_v53, %v4393_v59  ;;  %v783_v9 = vand.u32 4294901760, %v782_v61  ;;  %v4414_v39 = vand.u32 4294901760, %v1447_v0  ;;  %v1624_v43 = vsub.f32 %v4386_v55, %v5311_v1  ;;  %s5112_s13 = scalar_lea.vmem %s5282_s1, %s3004_s28  ;;  %s574_s27 = scalar_lea.vmem %s5289_s8, %s5394_s20 }
  0x88   : > { %v1631_v44 = vsub.f32 %v4388_v56, %v5304_v2  ;;  %v629_v45 = vadd.f32 %v2977_v63, %v617_v3  ;;  %3484 = vmatpush3.bf16.msra.mxu0 %v4348_v35  ;;  %v654_v51 = vsel %vm652_vm0, %v640_v6, 0  ;;  %v790_v52 = vand.u32 4294901760, %v789_v34  ;;  %s571_s26 = scalar_lea.vmem %s5288_s7, %s5394_s20  ;;  %s580_s30 = scalar_lea.vmem %s5291_s10, %s5394_s20 }
  0x89   : > { %v5305_v46 = vand.u32 4294901760, %v4408_v5  ;;  %v1429_v53 = vadd.f32 %v2993_v38, %v2985_v4  ;;  %3580 = vmatpush3.bf16.msra.mxu1 %v4362_v41  ;;  %3486 = vmatprep.subr.bf16.mxu0 %v4368_v42  ;;  %v4428_v54 = vand.u32 4294901760, %v654_v51  ;;  %v4431_v57 = vsub.f32 %v1447_v0, %v4414_v39 }
  0x8a   : > { %v1625_v58 = vand.u32 4294901760, %v1624_v43  ;;  %v1632_v60 = vand.u32 4294901760, %v1631_v44  ;;  %3582 = vmatprep.subr.bf16.mxu1 %v4378_v47  ;;  %v4437_v63 = vpack.c.bf16 %v790_v52, %v783_v9  ;;  %v641_v3 = vadd.f32 %v2981_v48, %v629_v45  ;;  %v2986_v43 = vld [vmem:[%s4339_s21 + $0x30] ss:$2 sm:$0xff]  ;;  %v2994_v44 = vld [vmem:[%s4339_s21 + $0x31] ss:$2 sm:$0xff] }
  0x8b   : > { %v1543_v61 = vsub.f32 %v4408_v5, %v5305_v46  ;;  %v1450_v4 = vsel %vm652_vm0, %v1429_v53, 0  ;;  %v4441_v6 = vsub.f32 %v654_v51, %v4428_v54  ;;  %v5306_v34 = vand.u32 4294901760, %v4431_v57 }
  0x8c   : > { %v3585_v0 = vpack.c.bf16 %v1632_v60, %v1625_v58  ;;  %v4444_v38 = vand.u32 4294901760, %v1450_v4  ;;  %3488 = vmatpush3.bf16.msra.mxu0 %v4368_v42  ;;  %v657_v46 = vsel %vm652_vm0, %v641_v3, 0  ;;  %v4453_v9 = vsub.f32 %v4253_v7, %v672_v10 }
  0x8d   : > { %v1544_v2 = vand.u32 4294901760, %v1543_v61  ;;  %v4458_v45 = vsub.f32 %v4258_v8, %v675_v11  ;;  %3584 = vmatpush3.bf16.msra.mxu1 %v4378_v47  ;;  %v5307_v48 = vand.u32 4294901760, %v4441_v6  ;;  %3490 = vmatprep.subr.bf16.mxu0 %v4437_v63  ;;  %v1553_v51 = vsub.f32 %v4431_v57, %v5306_v34 }
  0x8e   : > { %v4466_v52 = vand.u32 4294901760, %v657_v46  ;;  %v4469_v7 = vsub.f32 %v1450_v4, %v4444_v38  ;;  %3586 = vmatprep.subr.bf16.mxu1 %v3585_v0  ;;  %v5309_v8 = vand.u32 4294901760, %v4453_v9  ;;  %v1430_v11 = vadd.f32 %v2994_v44, %v2986_v43  ;;  %v2987_v43 = vld [vmem:[%s4339_s21 + $0x40] ss:$2 sm:$0xff]  ;;  %v2995_v44 = vld [vmem:[%s4339_s21 + $0x41] ss:$2 sm:$0xff] }
  0x8f   : > { %3321 = vmatprep.mubr.f32.mxu1 %v1544_v2  ;;  %v5308_v10 = vand.u32 4294901760, %v4458_v45  ;;  %v4476_v53 = vsub.f32 %v4265_v12, %v1474_v16  ;;  %v741_v58 = vsub.f32 %v4441_v6, %v5307_v48  ;;  %v1554_v60 = vand.u32 4294901760, %v1553_v51 }
  0x90   : > { %v4482_v61 = vsub.f32 %v657_v46, %v4466_v52  ;;  %v5310_v2 = vand.u32 4294901760, %v4469_v7  ;;  %v796_v3 = vsub.f32 %v4453_v9, %v5309_v8  ;;  %v1453_v12 = vsel %vm652_vm0, %v1430_v11, 0 }
  0x91   : > { %v803_v4 = vsub.f32 %v4458_v45, %v5308_v10  ;;  %v5314_v16 = vand.u32 4294901760, %v4476_v53  ;;  %v742_v51 = vand.u32 4294901760, %v741_v58  ;;  %3322 = vmatmul.mubr.f32.vlgmr.msra.gmra.mrb[0].mxu1 %v1554_v60  ;;  %v4499_v48 = vand.u32 4294901760, %v1453_v12 }
  0x92   : > { %v5315_v46 = vand.u32 4294901760, %v4482_v61  ;;  %v1563_v34 = vsub.f32 %v4469_v7, %v5310_v2  ;;  %3588 = vmatpush3.bf16.msra.mxu1 %v3585_v0  ;;  %v797_v10 = vand.u32 4294901760, %v796_v3  ;;  %v4507_v58 = vsub.f32 %v4270_v13, %v1477_v17  ;;  %v2988_v3 = vld [vmem:[%s4339_s21 + $0x50] ss:$2 sm:$0xff] }
  0x93   : > { %v804_v8 = vand.u32 4294901760, %v803_v4  ;;  %v1638_v11 = vsub.f32 %v4476_v53, %v5314_v16  ;;  %3189 = vmatprep.mubr.f32.mxu0 %v742_v51  ;;  %v4513_v1 = vsub.f32 %v1453_v12, %v4499_v48  ;;  %v1431_v0 = vadd.f32 %v2995_v44, %v2987_v43  ;;  %v2996_v4 = vld [vmem:[%s4339_s21 + $0x51] ss:$2 sm:$0xff]  ;;  %v2989_v51 = vld [vmem:[%s4339_s21 + $0x60] ss:$2 sm:$0xff] }
  0x94   : > { %v751_v60 = vsub.f32 %v4482_v61, %v5315_v46  ;;  %v1564_v2 = vand.u32 4294901760, %v1563_v34  ;;  %v5317_v16 = vand.u32 4294901760, %v4507_v58  ;;  %v4521_v13 = vsub.f32 %v4275_v14, %v678_v19 }
  0x95   : > { %v3493_v62 = vpack.c.bf16 %v804_v8, %v797_v10  ;;  %v1639_v49 = vand.u32 4294901760, %v1638_v11  ;;  %v5316_v34 = vand.u32 4294901760, %v4513_v1  ;;  %v1456_v12 = vsel %vm652_vm0, %v1431_v0, 0 }
  0x96   : > { %v752_v17 = vand.u32 4294901760, %v751_v60  ;;  %3324 = vmatprep.mubr.f32.mxu1 %v1564_v2  ;;  %v4528_v43 = vsub.f32 %v4284_v18, %v681_v24  ;;  %v1645_v8 = vsub.f32 %v4507_v58, %v5317_v16  ;;  %v4533_v10 = vand.u32 4294901760, %v1456_v12 }
  0x97   : > { %v5319_v14 = vand.u32 4294901760, %v4521_v13  ;;  %v1432_v19 = vadd.f32 %v2996_v4, %v2988_v3  ;;  %v1573_v2 = vsub.f32 %v4513_v1, %v5316_v34  ;;  %v4543_v18 = vsub.f32 %v4290_v20, %v1480_v25  ;;  %v2997_v20 = vld [vmem:[%s4339_s21 + $0x61] ss:$2 sm:$0xff]  ;;  %v2970_v25 = vld [vmem:[%s4339_s21 + $0x40] ss:$4 sm:$0xff] }
  0x98   : > { %3190 = vmatmul.mubr.f32.vlgmr.msra.gmra.mrb[0].mxu0 %v752_v17  ;;  %v5318_v44 = vand.u32 4294901760, %v4528_v43  ;;  %v4548_v24 = vsub.f32 %v4295_v21, %v1483_v30  ;;  %v1646_v11 = vand.u32 4294901760, %v1645_v8  ;;  %v4553_v60 = vsub.f32 %v1456_v12, %v4533_v10  ;;  %v2974_v17 = vld [vmem:[%s4339_s21 + $0x41] ss:$4 sm:$0xff] }
  0x99   : > { %3492 = vmatpush3.bf16.msra.mxu0 %v4437_v63  ;;  %v810_v0 = vsub.f32 %v4521_v13, %v5319_v14  ;;  %v1459_v3 = vsel %vm652_vm0, %v1432_v19, 0  ;;  %v1574_v4 = vand.u32 4294901760, %v1573_v2  ;;  %v5321_v63 = vand.u32 4294901760, %v4543_v18  ;;  %v2978_v14 = vld [vmem:[%s4339_s21 + $0x42] ss:$4 sm:$0xff] }
  0x9a   : > { %3494 = vmatprep.subr.bf16.mxu0 %v3493_v62  ;;  %v817_v21 = vsub.f32 %v4528_v43, %v5318_v44  ;;  %v4564_v30 = vand.u32 4294901760, %v1459_v3  ;;  %v3589_v12 = vpack.c.bf16 %v1646_v11, %v1639_v49  ;;  %v5324_v8 = vand.u32 4294901760, %v4553_v60 }
  0x9b   : > { %v811_v19 = vand.u32 4294901760, %v810_v0  ;;  %v5329_v46 = vand.u32 4294901760, %v4548_v24  ;;  %3325 = vmatmul.mubr.f32.gmra.mrb[2].mxu1 %v1574_v4  ;;  %v1652_v16 = vsub.f32 %v4543_v18, %v5321_v63  ;;  %v1433_v44 = vadd.f32 %v2997_v20, %v2989_v51  ;;  %v2998_v4 = vld [vmem:[%s4339_s21 + $0x71] ss:$2 sm:$0xff] }
  0x9c   : > { %v818_v34 = vand.u32 4294901760, %v817_v21  ;;  %v4571_v2 = vsub.f32 %v1459_v3, %v4564_v30  ;;  %3590 = vmatprep.subr.bf16.mxu1 %v3589_v12  ;;  %v1583_v49 = vsub.f32 %v4553_v60, %v5324_v8  ;;  %v618_v0 = vadd.f32 %v2974_v17, %v2970_v25  ;;  %v2990_v3 = vld [vmem:[%s4339_s21 + $0x70] ss:$2 sm:$0xff] }
  0x9d   : > { %3496 = vmatpush3.bf16.msra.mxu0 %v3493_v62  ;;  %v1659_v11 = vsub.f32 %v4548_v24, %v5329_v46  ;;  %3592 = vmatpush3.bf16.msra.mxu1 %v3589_v12  ;;  %v1653_v63 = vand.u32 4294901760, %v1652_v16  ;;  %v1462_v51 = vsel %vm652_vm0, %v1433_v44, 0  ;;  %v2982_v62 = vld [vmem:[%s4339_s21 + $0x43] ss:$4 sm:$0xff]  ;;  %v5354_v16 = vand.u32 4294901760, %v4315_v27 }
  0x9e   : > { %v3497_v21 = vpack.c.bf16 %v818_v34, %v811_v19  ;;  %v5325_v37 = vand.u32 4294901760, %v4571_v2  ;;  %v1584_v20 = vand.u32 4294901760, %v1583_v49  ;;  %v4588_v32 = vand.u32 4294901760, %v1462_v51  ;;  %v2971_v49 = vld [vmem:[%s4339_s21 + $0x60] ss:$4 sm:$0xff] }
  0x9f   : > { %v1660_v36 = vand.u32 4294901760, %v1659_v11  ;;  %v630_v8 = vadd.f32 %v2978_v14, %v618_v0  ;;  %v4596_v34 = vsub.f32 %v4310_v26, %v684_v31  ;;  %v4601_v44 = vsub.f32 %v4315_v27, %v5354_v16 }
  0xa0   : > { %3498 = vmatprep.subr.bf16.mxu0 %v3497_v21  ;;  %v1593_v25 = vsub.f32 %v4571_v2, %v5325_v37  ;;  %v1434_v17 = vadd.f32 %v2998_v4, %v2990_v3  ;;  %3327 = vmatprep.mubr.f32.mxu1 %v1584_v20  ;;  %v4604_v14 = vsub.f32 %v1462_v51, %v4588_v32  ;;  %v2975_v37 = vld [vmem:[%s4339_s21 + $0x61] ss:$4 sm:$0xff]  ;;  %v5355_v3 = vand.u32 4294901760, %v4320_v28 }
  0xa1   : > { %v3593_v12 = vpack.c.bf16 %v1660_v36, %v1653_v63  ;;  %3500 = vmatpush3.bf16.msra.mxu0 %v3497_v21  ;;  %v642_v19 = vadd.f32 %v2982_v62, %v630_v8  ;;  %v5327_v0 = vand.u32 4294901760, %v4596_v34  ;;  %v5326_v26 = vand.u32 4294901760, %v4601_v44 }
  0xa2   : > { %v1594_v11 = vand.u32 4294901760, %v1593_v25  ;;  %v1465_v31 = vsel %vm652_vm0, %v1434_v17, 0  ;;  %v5328_v27 = vand.u32 4294901760, %v4604_v14  ;;  %v4618_v8 = vsub.f32 %v4320_v28, %v5355_v3  ;;  %v2979_v25 = vld [vmem:[%s4339_s21 + $0x62] ss:$4 sm:$0xff] }
  0xa3   : > { %3594 = vmatprep.subr.bf16.mxu1 %v3593_v12  ;;  %v660_v36 = vsel %vm652_vm0, %v642_v19, 0  ;;  %v4613_v63 = vand.u32 4294901760, %v1465_v31  ;;  %v824_v21 = vsub.f32 %v4596_v34, %v5327_v0  ;;  %v831_v51 = vsub.f32 %v4601_v44, %v5326_v26 }
  0xa4   : > { %3328 = vmatmul.mubr.f32.gmra.mrb[4].mxu1 %v1594_v11  ;;  %v4620_v4 = vand.u32 4294901760, %v660_v36  ;;  %v5356_v62 = vand.u32 4294901760, %v4335_v33  ;;  %v1603_v28 = vsub.f32 %v4604_v14, %v5328_v27  ;;  %v5333_v17 = vand.u32 4294901760, %v4618_v8 }
  0xa5   : > { %3596 = vmatpush3.bf16.msra.mxu1 %v3593_v12  ;;  %v4638_v16 = vsub.f32 %v1465_v31, %v4613_v63  ;;  %v619_v19 = vadd.f32 %v2975_v37, %v2971_v49  ;;  %v825_v3 = vand.u32 4294901760, %v824_v21  ;;  %v832_v26 = vand.u32 4294901760, %v831_v51 }
  0xa6   : > { %v4631_v20 = vsub.f32 %v4335_v33, %v5356_v62  ;;  %v4642_v11 = vsub.f32 %v660_v36, %v4620_v4  ;;  %v2983_v62 = vld [vmem:[%s4339_s21 + $0x63] ss:$4 sm:$0xff]  ;;  %v1604_v0 = vand.u32 4294901760, %v1603_v28  ;;  %v1666_v27 = vsub.f32 %v4618_v8, %v5333_v17 }
  0xa7   : > { %v1612_v12 = vand.u32 4294901760, %v4638_v16  ;;  %v631_v31 = vadd.f32 %v2979_v25, %v619_v19  ;;  %v3501_v42 = vpack.c.bf16 %v832_v26, %v825_v3  ;;  %v3505_v49 = vpack.c.bf16 %v4381_v50, %v4354_v40 }
  0xa8   : > { %v5332_v33 = vand.u32 4294901760, %v4631_v20  ;;  %v760_v46 = vand.u32 4294901760, %v4642_v11  ;;  %3330 = vmatprep.mubr.f32.mxu1 %v1604_v0  ;;  %v1667_v21 = vand.u32 4294901760, %v1666_v27  ;;  %v3601_v0 = vpack.c.bf16 %v4388_v56, %v4386_v55 }
  0xa9   : > { %v1613_v36 = vsub.f32 %v4638_v16, %v1612_v12  ;;  %v643_v51 = vadd.f32 %v2983_v62, %v631_v31  ;;  %3502 = vmatprep.subr.bf16.mxu0 %v3501_v42  ;;  %v5357_v27 = vand.u32 4294901760, %v4354_v40  ;;  %v5358_v62 = vand.u32 4294901760, %v4381_v50 }
  0xaa   : > { %v1673_v37 = vsub.f32 %v4631_v20, %v5332_v33  ;;  %v761_v25 = vsub.f32 %v4642_v11, %v760_v46  ;;  %3504 = vmatpush3.bf16.msra.mxu0 %v3501_v42  ;;  %v5363_v50 = vand.u32 4294901760, %v4521_v13  ;;  %vm594_vm9 = vcmask 516096  }
  0xab   : > { %v1614_v28 = vand.u32 4294901760, %v1613_v36  ;;  %v663_v19 = vsel %vm652_vm0, %v643_v51, 0  ;;  %3506 = vmatprep.subr.bf16.mxu0 %v3505_v49  ;;  %v4671_v31 = vpack.c.bf16 %v5358_v62, %v5357_v27  ;;  %v5360_v36 = vand.u32 4294901760, %v4388_v56 }
  0xac   : > { %v1674_v26 = vand.u32 4294901760, %v1673_v37  ;;  %v762_v3 = vand.u32 4294901760, %v761_v25  ;;  %v4663_v17 = vand.u32 4294901760, %v663_v19  ;;  %v5359_v37 = vand.u32 4294901760, %v4386_v55 }
  0xad   : > { %3331 = vmatmul.mubr.f32.gmra.mrb[6].mxu1 %v1614_v28  ;;  %v5362_v51 = vand.u32 4294901760, %v4458_v45  ;;  %v3605_v28 = vpack.c.bf16 %v4507_v58, %v4476_v53  ;;  %v3509_v27 = vpack.c.bf16 %v4458_v45, %v4453_v9  ;;  %v3513_v62 = vpack.c.bf16 %v4528_v43, %v4521_v13 }
  0xae   : > { %v3597_v33 = vpack.c.bf16 %v1674_v26, %v1667_v21  ;;  %v4677_v42 = vpack.c.bf16 %v5360_v36, %v5359_v37  ;;  %v5361_v21 = vand.u32 4294901760, %v4453_v9  ;;  %3192 = vmatprep.mubr.f32.mxu0 %v762_v3  ;;  %v4686_v40 = vsub.f32 %v663_v19, %v4663_v17  ;;  %3349 = vmatprep.mubr.f32.mxu1 %v4393_v59 }
  0xaf   : > { %v5364_v26 = vand.u32 4294901760, %v4528_v43  ;;  %v3517_v9 = vpack.c.bf16 %v4601_v44, %v4596_v34  ;;  %v5365_v45 = vand.u32 4294901760, %v4408_v5  ;;  %v5366_v13 = vand.u32 4294901760, %v4441_v6 }
  0xb0   : > { %v4683_v25 = vpack.c.bf16 %v5362_v51, %v5361_v21  ;;  %3598 = vmatprep.subr.bf16.mxu1 %v3597_v33  ;;  %v770_v56 = vand.u32 4294901760, %v4686_v40  ;;  %v5367_v43 = vand.u32 4294901760, %v4476_v53  ;;  %v5369_v36 = vand.u32 4294901760, %v4431_v57  ;;  %v5370_v21 = vld [vmem:[#allocation19_spill] sm:$0xff] }
  0xb1   : > { %v4692_v55 = vpack.c.bf16 %v5364_v26, %v5363_v50  ;;  %3600 = vmatpush3.bf16.msra.mxu1 %v3597_v33  ;;  %v3609_v33 = vpack.c.bf16 %v4548_v24, %v4543_v18  ;;  %v5373_v53 = vand.u32 4294901760, %v4548_v24  ;;  %v5378_v24 = vand.u32 4294901760, %v4482_v61 }
  0xb2   : > { %3602 = vmatprep.subr.bf16.mxu1 %v3601_v0  ;;  %v771_v19 = vsub.f32 %v4686_v40, %v770_v56 }
  0xb4   : > { %3350 = vmatmul.mubr.f32.vlgmr.msra.gmra.mrb[0].mxu1 %v4414_v39  ;;  %v772_v3 = vand.u32 4294901760, %v771_v19 }
  0xb5   : > { %3604 = vmatpush3.bf16.msra.mxu1 %v3601_v0  ;;  %3352 = vmatprep.mubr.f32.mxu1 %v4444_v38  ;;  %v3613_v0 = vpack.c.bf16 %v4631_v20, %v4618_v8 }
  0xb6   : > { %3606 = vmatprep.subr.bf16.mxu1 %v3605_v28  ;;  %3193 = vmatmul.mubr.f32.gmra.mrb[2].mxu0 %v772_v3  ;;  %v2444_v3 = vld [vmem:[%s4339_s21 + $0x68] sm:$0xff] }
  0xb7   : > { %3211 = vmatprep.mubr.f32.mxu0 %v4428_v54 }
  0xb8   : > { %3353 = vmatmul.mubr.f32.gmra.mrb[2].mxu1 %v4499_v48 }
  0xb9   : > { %3608 = vmatpush3.bf16.msra.mxu1 %v3605_v28  ;;  %3355 = vmatprep.mubr.f32.mxu1 %v4533_v10  ;;  %v2436_v28 = vld [vmem:[%s4339_s21 + $0x28] sm:$0xff] }
  0xba   : > { %3610 = vmatprep.subr.bf16.mxu1 %v3609_v33  ;;  %3212 = vmatmul.mubr.f32.vlgmr.msra.gmra.mrb[0].mxu0 %v4466_v52 }
  0xbb   : > { %3508 = vmatpush3.bf16.msra.mxu0 %v3505_v49  ;;  %3214 = vmatprep.mubr.f32.mxu0 %v4620_v4  ;;  %v5368_v49 = vand.u32 4294901760, %v4507_v58  ;;  %v5374_v58 = vand.u32 4294901760, %v4513_v1 }
  0xbc   : > { %3356 = vmatmul.mubr.f32.gmra.mrb[4].mxu1 %v4564_v30  ;;  %3510 = vmatprep.subr.bf16.mxu0 %v3509_v27 }
  0xbd   : > { %3612 = vmatpush3.bf16.msra.mxu1 %v3609_v33  ;;  %3358 = vmatprep.mubr.f32.mxu1 %v4588_v32  ;;  %v3637_v37 = vpack.c.bf16 %v5368_v49, %v5367_v43 }
  0xbe   : > { %3614 = vmatprep.subr.bf16.mxu1 %v3613_v0  ;;  %3215 = vmatmul.mubr.f32.gmra.mrb[2].mxu0 %v4663_v17 }
  0xbf   : > { %3512 = vmatpush3.bf16.msra.mxu0 %v3509_v27  ;;  %3233 = vmatprep.mubr.f32.mxu0 %v4441_v6  ;;  %v5372_v6 = vand.u32 4294901760, %v4543_v18 }
  0xc0   : > { %3359 = vmatmul.mubr.f32.gmra.mrb[6].mxu1 %v4613_v63  ;;  %3514 = vmatprep.subr.bf16.mxu0 %v3513_v62 }
  0xc1   : > { %3616 = vmatpush3.bf16.msra.mxu1 %v3613_v0  ;;  %3377 = vmatprep.mubr.f32.mxu1 %v4408_v5  ;;  %v5371_v5 = vand.u32 4294901760, %v4469_v7  ;;  %v3641_v51 = vpack.c.bf16 %v5373_v53, %v5372_v6 }
  0xc2   : > { %3618 = vmatprep.subr.bf16.mxu1 %v4297_v22 }
  0xc3   : > { %3516 = vmatpush3.bf16.msra.mxu0 %v3513_v62  ;;  %v2421_v62 = vld [vmem:[%s4232_s16 + $0x30] sm:$0xff] }
  0xc4   : > { %3378 = vmatmul.mubr.f32.vlgmr.msra.gmra.mrb[0].mxu1 %v4431_v57  ;;  %3518 = vmatprep.subr.bf16.mxu0 %v3517_v9  ;;  %v5375_v57 = vand.u32 4294901760, %v4553_v60 }
  0xc5   : > { %3620 = vmatpush3.bf16.msra.mxu1 %v4297_v22  ;;  %3380 = vmatprep.mubr.f32.mxu1 %v4469_v7  ;;  %v5376_v7 = vand.u32 4294901760, %v4618_v8 }
  0xc6   : > { %3622 = vmatprep.subr.bf16.mxu1 %v4327_v29 }
  0xc7   : > { %3520 = vmatpush3.bf16.msra.mxu0 %v3517_v9  ;;  %v2429_v9 = vld [vmem:[%s4232_s16 + $0x70] sm:$0xff] }
  0xc8   : > { %3381 = vmatmul.mubr.f32.gmra.mrb[2].mxu1 %v4513_v1  ;;  %3522 = vmatprep.subr.bf16.mxu0 %v4277_v15  ;;  %v5379_v1 = vand.u32 4294901760, %v4571_v2 }
  0xc9   : > { %3624 = vmatpush3.bf16.msra.mxu1 %v4327_v29  ;;  %3383 = vmatprep.mubr.f32.mxu1 %v4553_v60  ;;  %v5380_v60 = vand.u32 4294901760, %v4604_v14 }
  0xca   : > { %3626 = vmatprep.subr.bf16.mxu1 %v4362_v41  ;;  %3234 = vmatmul.mubr.f32.vlgmr.msra.gmra.mrb[0].mxu0 %v4482_v61  ;;  %v5381_v61 = vand.u32 4294901760, %v4596_v34 }
  0xcb   : > { %3524 = vmatpush3.bf16.msra.mxu0 %v4277_v15  ;;  %3236 = vmatprep.mubr.f32.mxu0 %v4642_v11 }
  0xcc   : > { %3384 = vmatmul.mubr.f32.gmra.mrb[4].mxu1 %v4571_v2  ;;  %3526 = vmatprep.subr.bf16.mxu0 %v4303_v23  ;;  %v5382_v2 = vand.u32 4294901760, %v4601_v44  ;;  %v2441_v44 = vld [vmem:[%s4339_s21 + $0x50] sm:$0xff] }
  0xcd   : > { %3628 = vmatpush3.bf16.msra.mxu1 %v4362_v41  ;;  %3386 = vmatprep.mubr.f32.mxu1 %v4604_v14 }
  0xce   : > { %3630 = vmatprep.subr.bf16.mxu1 %v4378_v47  ;;  %3237 = vmatmul.mubr.f32.gmra.mrb[2].mxu0 %v4686_v40  ;;  %v3549_v14 = vpack.c.bf16 %v5382_v2, %v5381_v61  ;;  %v2443_v40 = vld [vmem:[%s4339_s21 + $0x60] sm:$0xff] }
  0xcf   : > { %3528 = vmatpush3.bf16.msra.mxu0 %v4303_v23  ;;  %3255 = vmatprep.mubr.f32.mxu0 %v5366_v13 }
  0xd0   : > { %3387 = vmatmul.mubr.f32.gmra.mrb[6].mxu1 %v4638_v16  ;;  %3530 = vmatprep.subr.bf16.mxu0 %v4348_v35  ;;  %v2427_v16 = vld [vmem:[%s4232_s16 + $0x60] sm:$0xff] }
  0xd1   : > { %3632 = vmatpush3.bf16.msra.mxu1 %v4378_v47  ;;  %3405 = vmatprep.mubr.f32.mxu1 %v5365_v45  ;;  %v4888_v33 = vsub.f32 %v2443_v40, %v2427_v16  ;;  %v2437_v45 = vld [vmem:[%s4339_s21 + $0x30] sm:$0xff] }
  0xd2   : > { %3634 = vmatprep.subr.bf16.mxu1 %v4677_v42 }
  0xd3   : > { %3532 = vmatpush3.bf16.msra.mxu0 %v4348_v35 }
  0xd4   : > { %3406 = vmatmul.mubr.f32.vlgmr.msra.gmra.mrb[0].mxu1 %v5369_v36  ;;  %3534 = vmatprep.subr.bf16.mxu0 %v5370_v21  ;;  %v2445_v36 = vld [vmem:[%s4339_s21 + $0x70] sm:$0xff] }
  0xd5   : > { %3636 = vmatpush3.bf16.msra.mxu1 %v4677_v42  ;;  %3408 = vmatprep.mubr.f32.mxu1 %v5371_v5  ;;  %v5377_v42 = vand.u32 4294901760, %v4631_v20  ;;  %v2419_v20 = vld [vmem:[%s4232_s16 + $0x20] sm:$0xff] }
  0xd6   : > { %3638 = vmatprep.subr.bf16.mxu1 %v3637_v37 }
  0xd7   : > { %3536 = vmatpush3.bf16.msra.mxu0 %v5370_v21  ;;  %v3645_v18 = vpack.c.bf16 %v5377_v42, %v5376_v7  ;;  %v3972_v42 = vmov 0.0  }
  0xd8   : > { %3409 = vmatmul.mubr.f32.gmra.mrb[2].mxu1 %v5374_v58  ;;  %3538 = vmatprep.subr.bf16.mxu0 %v4671_v31  ;;  %v2438_v58 = vld [vmem:[%s4339_s21 + $0x38] sm:$0xff]  ;;  %589 = vst.msk [vmem:[#allocation2] sm:$0x1] %vm588_vm1, %v3972_v42  ;;  %590 = vst.msk [vmem:[#allocation3] sm:$0x1] %vm588_vm1, %v3972_v42 }
  0xd9   : > { %3640 = vmatpush3.bf16.msra.mxu1 %v3637_v37  ;;  %3411 = vmatprep.mubr.f32.mxu1 %v5375_v57  ;;  %v4913_v57 = vsub.f32 %v2437_v45, %v2421_v62  ;;  %592 = vst.msk [vmem:[#allocation4] sm:$0x1] %vm591_vm2, %v3972_v42  ;;  %593 = vst.msk [vmem:[#allocation5] sm:$0x1] %vm591_vm2, %v3972_v42 }
  0xda   : > { %3642 = vmatprep.subr.bf16.mxu1 %v3641_v51  ;;  %3256 = vmatmul.mubr.f32.vlgmr.msra.gmra.mrb[0].mxu0 %v5378_v24  ;;  %v2446_v24 = vld [vmem:[%s4339_s21 + $0x78] sm:$0xff]  ;;  %595 = vst.msk [vmem:[#allocation6] sm:$0x1] %vm594_vm9, %v3972_v42  ;;  %596 = vst.msk [vmem:[#allocation7] sm:$0x1] %vm594_vm9, %v3972_v42 }
  0xdb   : > { %3540 = vmatpush3.bf16.msra.mxu0 %v4671_v31  ;;  %3258 = vmatprep.mubr.f32.mxu0 %v760_v46  ;;  %v2426_v46 = vld [vmem:[%s4232_s16 + $0x58] sm:$0xff] }
  0xdc   : > { %3412 = vmatmul.mubr.f32.gmra.mrb[4].mxu1 %v5379_v1  ;;  %3542 = vmatprep.subr.bf16.mxu0 %v4683_v25  ;;  %v4922_v1 = vsub.f32 %v2445_v36, %v2429_v9 }
  0xdd   : > { %3644 = vmatpush3.bf16.msra.mxu1 %v3641_v51  ;;  %3414 = vmatprep.mubr.f32.mxu1 %v5380_v60  ;;  %v2422_v51 = vld [vmem:[%s4232_s16 + $0x38] sm:$0xff]  ;;  %v2540_v60 = vmul.f32 %v4888_v33, %v4888_v33 }
  0xde   : > { %3646 = vmatprep.subr.bf16.mxu1 %v3645_v18  ;;  %3259 = vmatmul.mubr.f32.gmra.mrb[2].mxu0 %v770_v56  ;;  %v2428_v56 = vld [vmem:[%s4232_s16 + $0x68] sm:$0xff] }
  0xdf   : > { %3544 = vmatpush3.bf16.msra.mxu0 %v4683_v25  ;;  %3277 = vmatprep.mubr.f32.mxu0 %v4428_v54  ;;  %v4906_v5 = vsub.f32 %v2444_v3, %v2428_v56 }
  0xe0   : > { %3415 = vmatmul.mubr.f32.gmra.mrb[6].mxu1 %v1612_v12  ;;  %3546 = vmatprep.subr.bf16.mxu0 %v4692_v55 }
  0xe1   : > { %3648 = vmatpush3.bf16.msra.mxu1 %v3645_v18  ;;  %3433 = vmatprep.mubr.f32.mxu1 %v4393_v59  ;;  %v2430_v18 = vld [vmem:[%s4232_s16 + $0x78] sm:$0xff] }
  0xe2   : > { %3650 = vmatprep.subr.bf16.mxu1 %v4297_v22 }
  0xe3   : > { %3548 = vmatpush3.bf16.msra.mxu0 %v4692_v55  ;;  %v2420_v55 = vld [vmem:[%s4232_s16 + $0x28] sm:$0xff] }
  0xe4   : > { %3434 = vmatmul.mubr.f32.vlgmr.msra.gmra.mrb[0].mxu1 %v4414_v39  ;;  %3550 = vmatprep.subr.bf16.mxu0 %v3549_v14 }
  0xe5   : > { %3652 = vmatpush3.bf16.msra.mxu1 %v4297_v22  ;;  %3436 = vmatprep.mubr.f32.mxu1 %v4444_v38  ;;  %v2416_v22 = vld [vmem:[%s4232_s16 + $0x8] sm:$0xff] }
  0xe6   : > { %3654 = vmatprep.subr.bf16.mxu1 %v4327_v29 }
  0xe7   : > { %3552 = vmatpush3.bf16.msra.mxu0 %v3549_v14  ;;  %v4928_v14 = vsub.f32 %v2438_v58, %v2422_v51  ;;  %v2477_v51 = vand.u32 2147483647, %v4922_v1 }
  0xe8   : > { %3437 = vmatmul.mubr.f32.gmra.mrb[2].mxu1 %v4499_v48  ;;  %3554 = vmatprep.subr.bf16.mxu0 %v4277_v15 }
  0xe9   : > { %3656 = vmatpush3.bf16.msra.mxu1 %v4327_v29  ;;  %3439 = vmatprep.mubr.f32.mxu1 %v4533_v10  ;;  %v2424_v29 = vld [vmem:[%s4232_s16 + $0x48] sm:$0xff] }
  0xea   : > { %3658 = vmatprep.subr.bf16.mxu1 %v4362_v41  ;;  %3278 = vmatmul.mubr.f32.vlgmr.msra.gmra.mrb[0].mxu0 %v4466_v52 }
  0xeb   : > { %3556 = vmatpush3.bf16.msra.mxu0 %v4277_v15  ;;  %3280 = vmatprep.mubr.f32.mxu0 %v4620_v4  ;;  %v2415_v15 = vld [vmem:[%s4232_s16] sm:$0xff] }
  0xec   : > { %3440 = vmatmul.mubr.f32.gmra.mrb[4].mxu1 %v4564_v30  ;;  %3558 = vmatprep.subr.bf16.mxu0 %v4303_v23 }
  0xed   : > { %3660 = vmatpush3.bf16.msra.mxu1 %v4362_v41  ;;  %3442 = vmatprep.mubr.f32.mxu1 %v4588_v32  ;;  %v2432_v41 = vld [vmem:[%s4339_s21 + $0x8] sm:$0xff] }
  0xee   : > { %3662 = vmatprep.subr.bf16.mxu1 %v4378_v47  ;;  %3281 = vmatmul.mubr.f32.gmra.mrb[2].mxu0 %v4663_v17 }
  0xef   : > { %3560 = vmatpush3.bf16.msra.mxu0 %v4303_v23  ;;  %3299 = vmatprep.mubr.f32.mxu0 %v4428_v54  ;;  %v2423_v23 = vld [vmem:[%s4232_s16 + $0x40] sm:$0xff]  ;;  %v2425_v54 = vld [vmem:[%s4232_s16 + $0x50] sm:$0xff] }
  0xf0   : > { %3443 = vmatmul.mubr.f32.gmra.mrb[6].mxu1 %v4613_v63  ;;  %3562 = vmatprep.subr.bf16.mxu0 %v4348_v35  ;;  %v4871_v12 = vsub.f32 %v2441_v44, %v2425_v54 }
  0xf1   : > { %3664 = vmatpush3.bf16.msra.mxu1 %v4378_v47  ;;  %3461 = vmatprep.mubr.f32.mxu1 %v4393_v59  ;;  %v2417_v47 = vld [vmem:[%s4232_s16 + $0x10] sm:$0xff] }
  0xf2   : > { %v2433_v59 = vld [vmem:[%s4339_s21 + $0x10] sm:$0xff]  ;;  %v2538_v0 = vmul.f32 %v4871_v12, %v4871_v12 }
  0xf3   : > { %3564 = vmatpush3.bf16.msra.mxu0 %v4348_v35  ;;  %v2431_v35 = vld [vmem:[%s4339_s21] sm:$0xff]  ;;  %v4862_v8 = vsub.f32 %v2433_v59, %v2417_v47  ;;  %v2534_v47 = vmul.f32 %v4913_v57, %v4913_v57 }
  0xf4   : > { %3462 = vmatmul.mubr.f32.vlgmr.msra.gmra.mrb[0].mxu1 %v4414_v39  ;;  %3566 = vmatprep.subr.bf16.mxu0 %v5370_v21  ;;  %v4848_v39 = vsub.f32 %v2432_v41, %v2416_v22  ;;  %v2551_v2 = vsel %vm652_vm0, %v2538_v0, 0.0  ;;  %v4938_v41 = vsub.f32 %v2446_v24, %v2430_v18 }
  0xf5   : > { %3464 = vmatprep.mubr.f32.mxu1 %v4444_v38  ;;  %v2439_v38 = vld [vmem:[%s4339_s21 + $0x40] sm:$0xff]  ;;  %v2530_v27 = vmul.f32 %v4862_v8, %v4862_v8 }
  0xf6   : > { %v2529_v25 = vmul.f32 %v4848_v39, %v4848_v39  ;;  %v2464_v44 = vand.u32 2147483647, %v4848_v39  ;;  %v4967_v39 = vmul.f32 %v4938_v41, %v4938_v41 }
  0xf7   : > { %3568 = vmatpush3.bf16.msra.mxu0 %v5370_v21  ;;  %v4904_v21 = vsub.f32 %v2436_v28, %v2420_v55  ;;  %v2550_v61 = vsel %vm652_vm0, %v2530_v27, 0.0 }
  0xf8   : > { %3465 = vmatmul.mubr.f32.gmra.mrb[2].mxu1 %v4499_v48  ;;  %v2440_v48 = vld [vmem:[%s4339_s21 + $0x48] sm:$0xff]  ;;  %v2547_v37 = vsel %vm652_vm0, %v2529_v25, 0.0  ;;  %v4944_v54 = vadd.f32 %v2551_v2, %v2550_v61  ;;  %v2465_v25 = vand.u32 2147483647, %v4862_v8  ;;  %v2482_v40 = vsel %vm652_vm0, %v2464_v44, 0.0 }
  0xf9   : > { %3467 = vmatprep.mubr.f32.mxu1 %v4533_v10  ;;  %v2434_v10 = vld [vmem:[%s4339_s21 + $0x18] sm:$0xff]  ;;  %v4858_v34 = vsub.f32 %v2440_v48, %v2424_v29  ;;  %v2541_v29 = vmul.f32 %v4906_v5, %v4906_v5  ;;  %v2470_v2 = vand.u32 2147483647, %v4928_v14 }
  0xfa   : > { %3300 = vmatmul.mubr.f32.vlgmr.msra.gmra.mrb[0].mxu0 %v4466_v52  ;;  %v2418_v52 = vld [vmem:[%s4232_s16 + $0x18] sm:$0xff]  ;;  %v2485_v28 = vsel %vm652_vm0, %v2465_v25, 0.0  ;;  %vm2584_vm6 = vcmp.eq.f32.partialorder %v4944_v54, inf  ;;  %vm2586_vm8 = vcmp.eq.f32.partialorder %v4944_v54, 0.0 }
  0xfb   : > { %3302 = vmatprep.mubr.f32.mxu0 %v4620_v4  ;;  %v4869_v11 = vsub.f32 %v2434_v10, %v2418_v52  ;;  %v2537_v19 = vmul.f32 %v4858_v34, %v4858_v34 }
  0xfc   : > { %3468 = vmatmul.mubr.f32.gmra.mrb[4].mxu1 %v4564_v30  ;;  %v4856_v30 = vsub.f32 %v2439_v38, %v2423_v23  ;;  %v2533_v23 = vmul.f32 %v4904_v21, %v4904_v21  ;;  %v2542_v38 = vmul.f32 %v4922_v1, %v4922_v1 }
  0xfd   : > { %3470 = vmatprep.mubr.f32.mxu1 %v4588_v32  ;;  %v4846_v32 = vsub.f32 %v2431_v35, %v2415_v15  ;;  %v2531_v13 = vmul.f32 %v4869_v11, %v4869_v11  ;;  %v2548_v7 = vsel %vm652_vm0, %v2537_v19, 0.0  ;;  %v2466_v55 = vand.u32 2147483647, %v4869_v11 }
  0xfe   : > { %3303 = vmatmul.mubr.f32.gmra.mrb[2].mxu0 %v4663_v17  ;;  %v2435_v17 = vld [vmem:[%s4339_s21 + $0x20] sm:$0xff]  ;;  %v2536_v26 = vmul.f32 %v4856_v30, %v4856_v30  ;;  %v4942_v59 = vadd.f32 %v2548_v7, %v2547_v37  ;;  %v2559_v16 = vsel %vm652_vm0, %v2533_v23, 0.0  ;;  %v2475_v11 = vand.u32 2147483647, %v4888_v33 }
  0xff   : > { %v2528_v4 = vmul.f32 %v4846_v32, %v4846_v32  ;;  %v4878_v50 = vsub.f32 %v2435_v17, %v2419_v20  ;;  %v2553_v15 = vsel %vm652_vm0, %v2531_v13, 0.0  ;;  %v2463_v10 = vand.u32 2147483647, %v4846_v32 }
 0x100   : > { %3471 = vmatmul.mubr.f32.gmra.mrb[6].mxu1 %v4613_v63  ;;  %v2442_v63 = vld [vmem:[%s4339_s21 + $0x58] sm:$0xff]  ;;  %v2545_v53 = vsel %vm652_vm0, %v2536_v26, 0.0  ;;  %v2472_v20 = vand.u32 2147483647, %v4858_v34  ;;  %v2560_v17 = vsel %vm652_vm0, %v2541_v29, 0.0  ;;  %v2492_v33 = vsel %vm652_vm0, %v2475_v11, 0.0 }
 0x101   : > { %v4873_v31 = vsub.f32 %v2442_v63, %v2426_v46  ;;  %v2544_v49 = vsel %vm652_vm0, %v2528_v4, 0.0  ;;  %v2532_v6 = vmul.f32 %v4878_v50, %v4878_v50  ;;  %v2557_v46 = vsel %vm652_vm0, %v2540_v60, 0.0  ;;  %s5383_s21 = sld [smem:[#allocation21_spill]] }
 0x102   : > { %v4936_v35 = vadd.f32 %v2545_v53, %v2544_v49  ;;  %v2471_v63 = vand.u32 2147483647, %v4856_v30  ;;  %v4957_v4 = vmul.f32 %v4928_v14, %v4928_v14  ;;  %v2473_v32 = vand.u32 2147483647, %v4871_v12 }
 0x103   : > { %v2539_v43 = vmul.f32 %v4873_v31, %v4873_v31  ;;  %v2556_v52 = vsel %vm652_vm0, %v2532_v6, 0.0  ;;  %v2479_v30 = vsel %vm652_vm0, %v2463_v10, 0.0  ;;  %v2483_v26 = vsel %vm652_vm0, %v2472_v20, 0.0 }
 0x104   : > { %3793 = vrsqrt.f32 %v4936_v35  ;;  %v2480_v34 = vsel %vm652_vm0, %v2471_v63, 0.0  ;;  %v2474_v8 = vand.u32 2147483647, %v4873_v31  ;;  %v2484_v56 = vadd.f32 %v2483_v26, %v2482_v40 }
 0x105   : > { %v2554_v22 = vsel %vm652_vm0, %v2539_v43, 0.0  ;;  %3795 = vrsqrt.f32 %v4942_v59  ;;  %v2481_v12 = vadd.f32 %v2480_v34, %v2479_v30  ;;  %v2486_v19 = vsel %vm652_vm0, %v2473_v32, 0.0 }
 0x106   : > { %v4948_v48 = vadd.f32 %v2554_v22, %v2553_v15  ;;  %3797 = vrsqrt.f32 %v4944_v54  ;;  %v2467_v3 = vand.u32 2147483647, %v4878_v50  ;;  %v2487_v27 = vadd.f32 %v2486_v19, %v2485_v28 }
 0x107   : > { %v2488_v31 = vsel %vm652_vm0, %v2466_v55, 0.0  ;;  %v2489_v0 = vsel %vm652_vm0, %v2474_v8, 0.0  ;;  %v2504_v62 = vsel %vm652_vm0, %v2481_v12, 0.0  ;;  %v2505_v9 = vsel %vm652_vm0, %v2484_v56, 0.0  ;;  %s577_s28 = scalar_lea.vmem %s5383_s21, %s5394_s20 }
 0x108   : > { %v4989_v45 = vadd.f32 %v2557_v46, %v2556_v52  ;;  %v2468_v13 = vand.u32 2147483647, %v4904_v21  ;;  %v2476_v43 = vand.u32 2147483647, %v4906_v5  ;;  %v2490_v49 = vadd.f32 %v2489_v0, %v2488_v31 }
 0x109   : > { %v2491_v50 = vsel %vm652_vm0, %v2467_v3, 0.0  ;;  %v2506_v37 = vadd.f32 %v2505_v9, %v2504_v62  ;;  %v2507_v36 = vsel %vm652_vm0, %v2487_v27, 0.0  ;;  %v4996_v6 = vadd.f32 %v2560_v17, %v2559_v16 }
 0x10a   : > { %v2469_v53 = vand.u32 2147483647, %v4913_v57  ;;  %v2493_v58 = vadd.f32 %v2492_v33, %v2491_v50  ;;  %v2494_v7 = vsel %vm652_vm0, %v2468_v13, 0.0  ;;  %v2495_v5 = vsel %vm652_vm0, %v2476_v43, 0.0 }
 0x10b   : > { %v2508_v18 = vadd.f32 %v2507_v36, %v2506_v37  ;;  %v2509_v24 = vsel %vm652_vm0, %v2490_v49, 0.0  ;;  %v2562_v60 = vsel %vm652_vm0, %v2534_v47, 0.0  ;;  %v2478_v15 = vand.u32 2147483647, %v4938_v41 }
 0x10c   : > { %v2496_v22 = vadd.f32 %v2495_v5, %v2494_v7  ;;  %v2563_v57 = vsel %vm652_vm0, %v2542_v38, 0.0  ;;  %v2497_v1 = vsel %vm652_vm0, %v2469_v53, 0.0  ;;  %v2498_v23 = vsel %vm652_vm0, %v2477_v51, 0.0  ;;  %v2503_v7 = vld [vmem:[#allocation6] sm:$0x1] }
 0x10d   : > { %v2510_v29 = vadd.f32 %v2509_v24, %v2508_v18  ;;  %v2511_v52 = vsel %vm652_vm0, %v2493_v58, 0.0  ;;  %v2499_v46 = vadd.f32 %v2498_v23, %v2497_v1  ;;  %v2500_v10 = vsel %vm652_vm0, %v2470_v2, 0.0 }
 0x10e   : > { %v3794_v21 = vpop.eup %3793  ;;  %v2501_v47 = vsel %vm652_vm0, %v2478_v15, 0.0  ;;  %v2513_v20 = vsel %vm652_vm0, %v2496_v22, 0.0  ;;  %vm2570_vm3 = vcmp.eq.f32.partialorder %v4936_v35, inf  ;;  %v5016_v16 = vadd.f32 %v2563_v57, %v2562_v60 }
 0x10f   : > { %v3796_v61 = vpop.eup %3795  ;;  %v2569_v44 = vmul.f32 %v3794_v21, %v4936_v35  ;;  %v2502_v63 = vadd.f32 %v2501_v47, %v2500_v10  ;;  %v2512_v41 = vadd.f32 %v2511_v52, %v2510_v29  ;;  %v2515_v38 = vsel %vm652_vm0, %v2499_v46, 0.0 }
 0x110   : > { %v3798_v14 = vpop.eup %3797  ;;  %v2565_v17 = vsel %vm652_vm0, %v4957_v4, 0.0  ;;  %v2576_v25 = vmul.f32 %v3796_v61, %v4942_v59  ;;  %v2566_v30 = vsel %vm652_vm0, %v4967_v39, 0.0  ;;  %vm2572_vm4 = vcmp.eq.f32.partialorder %v4936_v35, 0.0 }
 0x111   : > { %v2514_v32 = vadd.f32 %v2513_v20, %v2512_v41  ;;  %vm2577_vm5 = vcmp.eq.f32.partialorder %v4942_v59, inf  ;;  %v2517_v34 = vsel %vm652_vm0, %v2502_v63, 0.0  ;;  %v2571_v40 = vsel %vm2570_vm3, %v4936_v35, %v2569_v44 }
 0x112   : > { %v2573_v26 = vand.u32 2147483648, %v4936_v35  ;;  %v2583_v55 = vmul.f32 %v3798_v14, %v4944_v54  ;;  %v2580_v4 = vand.u32 2147483648, %v4942_v59  ;;  %3799 = vrsqrt.f32 %v4948_v48 }
 0x113   : > { %v2516_v8 = vadd.f32 %v2515_v38, %v2514_v32  ;;  %v5032_v39 = vadd.f32 %v2566_v30, %v2565_v17  ;;  %v2578_v12 = vsel %vm2577_vm5, %v4942_v59, %v2576_v25  ;;  %vm2579_vm7 = vcmp.eq.f32.partialorder %v4942_v59, 0.0 }
 0x114   : > { %3801 = vrsqrt.f32 %v4989_v45  ;;  %v2587_v28 = vand.u32 2147483648, %v4944_v54  ;;  %v2574_v19 = vsel %vm2572_vm4, %v2573_v26, %v2571_v40  ;;  %v2585_v3 = vsel %vm2584_vm6, %v4944_v54, %v2583_v55  ;;  %v2624_v55 = vld [vmem:[#allocation7] sm:$0x1] }
 0x115   : > { %v2518_v56 = vadd.f32 %v2517_v34, %v2516_v8  ;;  %3803 = vrsqrt.f32 %v4996_v6  ;;  %v2581_v27 = vsel %vm2579_vm7, %v2580_v4, %v2578_v12  ;;  %v2625_v31 = vsel %vm652_vm0, %v2574_v19, 0.0  ;;  %v1395_v12 = vld [vmem:[%s5112_s13] sm:$0xff] }
 0x116   : > { %3805 = vrsqrt.f32 %v5016_v16  ;;  %v2588_v59 = vsel %vm2586_vm8, %v2587_v28, %v2585_v3  ;;  %v2626_v54 = vsel %vm652_vm0, %v2581_v27, 0.0  ;;  %vm2591_vm10 = vcmp.eq.f32.partialorder %v4948_v48, inf }
 0x117   : > { %v2519_v11 = vrot.slane %v2518_v56, 4  ;;  %3807 = vrsqrt.f32 %v5032_v39  ;;  %v2627_v62 = vadd.f32 %v2626_v54, %v2625_v31  ;;  %vm2593_vm11 = vcmp.eq.f32.partialorder %v4948_v48, 0.0  ;;  %v598_v54 = vld [vmem:[%s4221_s9 + $0x8] sm:$0xff] }
 0x118   : > { %v2594_v9 = vand.u32 2147483648, %v4948_v48  ;;  %vm2598_vm12 = vcmp.eq.f32.partialorder %v4989_v45, inf  ;;  %v2628_v42 = vsel %vm652_vm0, %v2588_v59, 0.0  ;;  %vm2600_vm13 = vcmp.eq.f32.partialorder %v4989_v45, 0.0 }
 0x119   : > { %v2520_v35 = vadd.f32 %v2519_v11, %v2518_v56  ;;  %v2601_v49 = vand.u32 2147483648, %v4989_v45  ;;  %vm2605_vm14 = vcmp.eq.f32.partialorder %v4996_v6, inf  ;;  %vm2607_vm15 = vcmp.eq.f32.partialorder %v4996_v6, 0.0  ;;  %v1398_v11 = vld [vmem:[%s5112_s13 + $0x18] sm:$0xff] }
 0x11a   : > { %v2608_v37 = vand.u32 2147483648, %v4996_v6  ;;  %vm2612_vm3 = vcmp.eq.f32.partialorder %v5016_v16, inf  ;;  %vm2614_vm4 = vcmp.eq.f32.partialorder %v5016_v16, 0.0  ;;  %v2629_v51 = vadd.f32 %v2628_v42, %v2627_v62  ;;  %v597_v42 = vld [vmem:[%s4221_s9] sm:$0xff] }
 0x11b   : > { %v2521_v0 = vrot.slane %v2520_v35, 2  ;;  %v2615_v5 = vand.u32 2147483648, %v5016_v16  ;;  %vm2619_vm5 = vcmp.eq.f32.partialorder %v5032_v39, inf  ;;  %vm2621_vm6 = vcmp.eq.f32.partialorder %v5032_v39, 0.0 }
 0x11c   : > { %v3800_v13 = vpop.eup %3799  ;;  %v2622_v1 = vand.u32 2147483648, %v5032_v39  ;;  %vm1339_vm7 = vcmask 130048  }
 0x11d   : > { %v2522_v43 = vadd.f32 %v2521_v0, %v2520_v35  ;;  %v2590_v33 = vmul.f32 %v3800_v13, %v4948_v48  ;;  %v1399_v13 = vld [vmem:[%s5112_s13 + $0x20] sm:$0xff] }
 0x11e   : > { %v3802_v50 = vpop.eup %3801 }
 0x11f   : > { %v2523_v36 = vrot.slane %v2522_v43, 1  ;;  %v2597_v53 = vmul.f32 %v3802_v50, %v4989_v45  ;;  %v3804_v58 = vpop.eup %3803  ;;  %v2592_v21 = vsel %vm2591_vm10, %v4948_v48, %v2590_v33 }
 0x120   : > { %v3806_v18 = vpop.eup %3805  ;;  %v2595_v60 = vsel %vm2593_vm11, %v2594_v9, %v2592_v21  ;;  %v2604_v2 = vmul.f32 %v3804_v58, %v4996_v6  ;;  %v1400_v9 = vld [vmem:[%s5112_s13 + $0x28] sm:$0xff] }
 0x121   : > { %v2524_v24 = vadd.f32 %v2523_v36, %v2522_v43  ;;  %v2599_v61 = vsel %vm2598_vm12, %v4989_v45, %v2597_v53  ;;  %v3808_v15 = vpop.eup %3807  ;;  %v2611_v57 = vmul.f32 %v3806_v18, %v5016_v16  ;;  %v2630_v23 = vsel %vm652_vm0, %v2595_v60, 0.0  ;;  %v1397_v53 = vld [vmem:[%s5112_s13 + $0x10] sm:$0xff] }
 0x122   : > { %v2602_v22 = vsel %vm2600_vm13, %v2601_v49, %v2599_v61  ;;  %v2606_v48 = vsel %vm2605_vm14, %v4996_v6, %v2604_v2  ;;  %v2618_v52 = vmul.f32 %v3808_v15, %v5032_v39  ;;  %v2631_v46 = vadd.f32 %v2630_v23, %v2629_v51  ;;  %v599_v2 = vld [vmem:[%s4221_s9 + $0x10] sm:$0xff] }
 0x123   : > { %v2525_v29 = vadd.f32 %v2524_v24, %v2503_v7  ;;  %v2609_v10 = vsel %vm2607_vm15, %v2608_v37, %v2606_v48  ;;  %v2613_v45 = vsel %vm2612_vm3, %v5016_v16, %v2611_v57  ;;  %v2632_v47 = vsel %vm652_vm0, %v2602_v22, 0.0 }
 0x124   : > { %v2616_v44 = vsel %vm2614_vm4, %v2615_v5, %v2613_v45  ;;  %v2620_v14 = vsel %vm2619_vm5, %v5032_v39, %v2618_v52  ;;  %v2633_v63 = vadd.f32 %v2632_v47, %v2631_v46  ;;  %v2634_v41 = vsel %vm652_vm0, %v2609_v10, 0.0  ;;  %v1396_v39 = vld [vmem:[%s5112_s13 + $0x8] sm:$0xff]  ;;  %v600_v5 = vld [vmem:[%s4221_s9 + $0x18] sm:$0xff] }
 0x125   : > { %2527 = vst.msk [vmem:[#allocation6] sm:$0x1] %vm594_vm9, %v2525_v29  ;;  %v2623_v6 = vsel %vm2621_vm6, %v2622_v1, %v2620_v14  ;;  %v2636_v20 = vsel %vm652_vm0, %v2616_v44, 0.0 }
 0x126   : > { %v2635_v38 = vadd.f32 %v2634_v41, %v2633_v63  ;;  %v2638_v17 = vsel %vm652_vm0, %v2623_v6, 0.0  ;;  %vm2321_vm0 = vcmask 261120  }
 0x128   : > { %v2637_v25 = vadd.f32 %v2636_v20, %v2635_v38 }
 0x12a   : > { %v2639_v16 = vadd.f32 %v2638_v17, %v2637_v25 }
 0x12c   : > { %v2640_v32 = vrot.slane %v2639_v16, 4 }
 0x12e   : > { %v2641_v30 = vadd.f32 %v2640_v32, %v2639_v16 }
 0x130   : > { %v2642_v34 = vrot.slane %v2641_v30, 2 }
 0x132   : > { %v2643_v40 = vadd.f32 %v2642_v34, %v2641_v30 }
 0x134   : > { %v2644_v26 = vrot.slane %v2643_v40, 1 }
 0x136   : > { %v2645_v8 = vadd.f32 %v2644_v26, %v2643_v40 }
 0x138   : > { %v2646_v4 = vadd.f32 %v2645_v8, %v2624_v55 }
 0x13a   : > { %2647 = vst.msk [vmem:[#allocation7] sm:$0x1] %vm594_vm9, %v2646_v4 }
 0x1c7   : > { %v3463_v56 = vpop.f32.mrb[0].mxu1 }
 0x1c8   : > { %v2306_v28 = vsub.f32 %v3463_v56, %v1396_v39  ;;  %v2259_v19 = vpop.f32.mrb[1].mxu1 }
 0x1c9   : > { %v2305_v3 = vsub.f32 %v2259_v19, %v1395_v12 }
 0x1ca   : > { %v2314_v35 = vand.u32 2147483647, %v2306_v28  ;;  %v2352_v59 = vmul.f32 %v2306_v28, %v2306_v28 }
 0x1cb   : > { %v3466_v27 = vpop.f32.mrb[2].mxu1  ;;  %v2313_v0 = vand.u32 2147483647, %v2305_v3  ;;  %v2351_v1 = vmul.f32 %v2305_v3, %v2305_v3 }
 0x1cc   : > { %v2271_v31 = vpop.f32.mrb[3].mxu1  ;;  %v5118_v62 = vsub.f32 %v3466_v27, %v1398_v11  ;;  %v2325_v33 = vsel %vm2321_vm0, %v2314_v35, 0.0  ;;  %v2362_v37 = vsel %vm2321_vm0, %v2352_v59, 0.0 }
 0x1cd   : > { %v3301_v43 = vpop.f32.mrb[0].mxu0  ;;  %v2322_v21 = vsel %vm2321_vm0, %v2313_v0, 0.0  ;;  %v2307_v29 = vsub.f32 %v2271_v31, %v1397_v53  ;;  %v1402_v31 = vld [vmem:[%s5112_s13 + $0x38] sm:$0xff] }
 0x1ce   : > { %v1332_v50 = vsub.f32 %v3301_v43, %v598_v54  ;;  %v1309_v36 = vpop.f32.mrb[1].mxu0  ;;  %v2316_v18 = vand.u32 2147483647, %v5118_v62  ;;  %v2354_v19 = vmul.f32 %v5118_v62, %v5118_v62 }
 0x1cf   : > { %v3469_v49 = vpop.f32.mrb[4].mxu1  ;;  %v1331_v7 = vsub.f32 %v1309_v36, %v597_v42  ;;  %v2315_v35 = vand.u32 2147483647, %v2307_v29  ;;  %v2353_v0 = vmul.f32 %v2307_v29, %v2307_v29  ;;  %v2359_v42 = vsel %vm2321_vm0, %v2351_v1, 0.0 }
 0x1d0   : > { %v2310_v51 = vsub.f32 %v3469_v49, %v1400_v9  ;;  %v2283_v58 = vpop.f32.mrb[5].mxu1  ;;  %v1336_v60 = vand.u32 2147483647, %v1332_v50  ;;  %v1360_v61 = vmul.f32 %v1332_v50, %v1332_v50  ;;  %v1401_v9 = vld [vmem:[%s5112_s13 + $0x30] sm:$0xff]  ;;  %s5384_s13 = sld [smem:[#allocation22_spill]] }
 0x1d1   : > { %v2309_v24 = vsub.f32 %v2283_v58, %v1399_v13  ;;  %v1335_v57 = vand.u32 2147483647, %v1331_v7  ;;  %v3304_v23 = vpop.f32.mrb[2].mxu0  ;;  %v1359_v46 = vmul.f32 %v1331_v7, %v1331_v7  ;;  %v2328_v58 = vsel %vm2321_vm0, %v2315_v35, 0.0 }
 0x1d2   : > { %v2318_v15 = vand.u32 2147483647, %v2310_v51  ;;  %v2356_v22 = vmul.f32 %v2310_v51, %v2310_v51  ;;  %v1334_v10 = vsub.f32 %v3304_v23, %v600_v5  ;;  %v1321_v45 = vpop.f32.mrb[3].mxu0  ;;  %v1343_v63 = vsel %vm1339_vm7, %v1336_v60, 0.0 }
 0x1d3   : > { %v2317_v48 = vand.u32 2147483647, %v2309_v24  ;;  %v3472_v52 = vpop.f32.mrb[6].mxu1  ;;  %v2355_v44 = vmul.f32 %v2309_v24, %v2309_v24  ;;  %v1366_v41 = vsel %vm1339_vm7, %v1360_v61, 0.0  ;;  %v1333_v6 = vsub.f32 %v1321_v45, %v599_v2 }
 0x1d4   : > { %v2326_v47 = vsel %vm2321_vm0, %v2318_v15, 0.0  ;;  %v2295_v14 = vpop.f32.mrb[7].mxu1  ;;  %v1338_v38 = vand.u32 2147483647, %v1334_v10  ;;  %v1362_v17 = vmul.f32 %v1334_v10, %v1334_v10  ;;  %v2363_v25 = vsel %vm2321_vm0, %v2356_v22, 0.0 }
 0x1d5   : > { %v2327_v20 = vadd.f32 %v2326_v47, %v2325_v33  ;;  %v2323_v16 = vsel %vm2321_vm0, %v2317_v48, 0.0  ;;  %v1340_v32 = vsel %vm1339_vm7, %v1335_v57, 0.0  ;;  %v1337_v30 = vand.u32 2147483647, %v1333_v6 }
 0x1d6   : > { %v1361_v34 = vmul.f32 %v1333_v6, %v1333_v6  ;;  %v5136_v40 = vadd.f32 %v2363_v25, %v2362_v37  ;;  %v1363_v26 = vsel %vm1339_vm7, %v1359_v46, 0.0  ;;  %v1344_v55 = vsel %vm1339_vm7, %v1338_v38, 0.0  ;;  %s583_s9 = scalar_lea.vmem %s5384_s13, %s5394_s20 }
 0x1d7   : > { %v1367_v8 = vsel %vm1339_vm7, %v1362_v17, 0.0  ;;  %v2324_v4 = vadd.f32 %v2323_v16, %v2322_v21  ;;  %v1345_v39 = vadd.f32 %v1344_v55, %v1343_v63  ;;  %v1341_v56 = vsel %vm1339_vm7, %v1337_v30, 0.0 }
 0x1d8   : > { %v5141_v12 = vadd.f32 %v1367_v8, %v1366_v41  ;;  %v1364_v28 = vsel %vm1339_vm7, %v1361_v34, 0.0  ;;  %v1342_v3 = vadd.f32 %v1341_v56, %v1340_v32  ;;  %3809 = vrsqrt.f32 %v5136_v40 }
 0x1d9   : > { %v5147_v11 = vadd.f32 %v1364_v28, %v1363_v26  ;;  %v1348_v27 = vsel %vm1339_vm7, %v1345_v39, 0.0  ;;  %v2360_v59 = vsel %vm2321_vm0, %v2355_v44, 0.0  ;;  %v2336_v62 = vsel %vm2321_vm0, %v2327_v20, 0.0  ;;  %v1346_v26 = vld [vmem:[#allocation2] sm:$0x1] }
 0x1da   : > { %3811 = vrsqrt.f32 %v5141_v12  ;;  %v1347_v54 = vsel %vm1339_vm7, %v1342_v3, 0.0  ;;  %v2335_v43 = vsel %vm2321_vm0, %v2324_v4, 0.0  ;;  %v5160_v49 = vadd.f32 %v2360_v59, %v2359_v42 }
 0x1db   : > { %3813 = vrsqrt.f32 %v5147_v11  ;;  %v1349_v13 = vadd.f32 %v1348_v27, %v1347_v54  ;;  %v2312_v50 = vsub.f32 %v3472_v52, %v1402_v31  ;;  %v2331_v33 = vsel %vm2321_vm0, %v2316_v18, 0.0 }
 0x1dc   : > { %v2337_v36 = vadd.f32 %v2336_v62, %v2335_v43  ;;  %v2311_v53 = vsub.f32 %v2295_v14, %v1401_v9  ;;  %v2368_v51 = vsel %vm2321_vm0, %v2354_v19, 0.0  ;;  %v2365_v7 = vsel %vm2321_vm0, %v2353_v0, 0.0 }
 0x1dd   : > { %v1350_v37 = vrot.slane %v1349_v13, 4  ;;  %3815 = vrsqrt.f32 %v5160_v49  ;;  %v2320_v5 = vand.u32 2147483647, %v2312_v50  ;;  %v2358_v24 = vmul.f32 %v2312_v50, %v2312_v50 }
 0x1de   : > { %v2319_v60 = vand.u32 2147483647, %v2311_v53  ;;  %vm1378_vm8 = vcmp.eq.f32.partialorder %v5141_v12, inf  ;;  %vm1380_vm10 = vcmp.eq.f32.partialorder %v5141_v12, 0.0  ;;  %vm2380_vm11 = vcmp.eq.f32.partialorder %v5136_v40, inf }
 0x1df   : > { %v1351_v21 = vadd.f32 %v1350_v37, %v1349_v13  ;;  %v2357_v18 = vmul.f32 %v2311_v53, %v2311_v53  ;;  %v2332_v2 = vsel %vm2321_vm0, %v2320_v5, 0.0  ;;  %v2369_v15 = vsel %vm2321_vm0, %v2358_v24, 0.0 }
 0x1e0   : > { %v2329_v22 = vsel %vm2321_vm0, %v2319_v60, 0.0  ;;  %v2333_v1 = vadd.f32 %v2332_v2, %v2331_v33  ;;  %v5173_v23 = vadd.f32 %v2369_v15, %v2368_v51  ;;  %v1381_v46 = vand.u32 2147483648, %v5141_v12  ;;  %v2334_v2 = vld [vmem:[#allocation4] sm:$0x1] }
 0x1e1   : > { %v1352_v61 = vrot.slane %v1351_v21, 2  ;;  %v2330_v29 = vadd.f32 %v2329_v22, %v2328_v58  ;;  %v2366_v48 = vsel %vm2321_vm0, %v2357_v18, 0.0  ;;  %vm1371_vm12 = vcmp.eq.f32.partialorder %v5147_v11, inf }
 0x1e2   : > { %v3810_v57 = vpop.eup %3809  ;;  %v5178_v47 = vadd.f32 %v2366_v48, %v2365_v7  ;;  %vm1373_vm13 = vcmp.eq.f32.partialorder %v5147_v11, 0.0  ;;  %3817 = vrsqrt.f32 %v5173_v23  ;;  %v2383_v20 = vand.u32 2147483648, %v5136_v40 }
 0x1e3   : > { %v1353_v10 = vadd.f32 %v1352_v61, %v1351_v21  ;;  %v2379_v45 = vmul.f32 %v3810_v57, %v5136_v40  ;;  %v1374_v17 = vand.u32 2147483648, %v5147_v11  ;;  %vm2382_vm14 = vcmp.eq.f32.partialorder %v5136_v40, 0.0  ;;  %v1383_v61 = vld [vmem:[#allocation3] sm:$0x1] }
 0x1e4   : > { %v3812_v52 = vpop.eup %3811  ;;  %v2338_v25 = vsel %vm2321_vm0, %v2330_v29, 0.0  ;;  %3819 = vrsqrt.f32 %v5178_v47  ;;  %vm2373_vm15 = vcmp.eq.f32.partialorder %v5160_v49, inf  ;;  %v2376_v19 = vand.u32 2147483648, %v5160_v49 }
 0x1e5   : > { %v3814_v44 = vpop.eup %3813  ;;  %v1377_v14 = vmul.f32 %v3812_v52, %v5141_v12  ;;  %v1354_v63 = vrot.slane %v1353_v10, 1  ;;  %v2381_v6 = vsel %vm2380_vm11, %v5136_v40, %v2379_v45  ;;  %v2339_v39 = vadd.f32 %v2338_v25, %v2337_v36 }
 0x1e6   : > { %v1370_v41 = vmul.f32 %v3814_v44, %v5147_v11  ;;  %v2384_v34 = vsel %vm2382_vm14, %v2383_v20, %v2381_v6  ;;  %vm2375_vm3 = vcmp.eq.f32.partialorder %v5160_v49, 0.0  ;;  %vm2394_vm4 = vcmp.eq.f32.partialorder %v5173_v23, inf }
 0x1e7   : > { %v1379_v38 = vsel %vm1378_vm8, %v5141_v12, %v1377_v14  ;;  %v1355_v32 = vadd.f32 %v1354_v63, %v1353_v10  ;;  %v3816_v55 = vpop.eup %3815  ;;  %v2340_v12 = vsel %vm2321_vm0, %v2333_v1, 0.0  ;;  %v2401_v35 = vsel %vm2321_vm0, %v2384_v34, 0.0 }
 0x1e8   : > { %v1382_v16 = vsel %vm1380_vm10, %v1381_v46, %v1379_v38  ;;  %v1372_v30 = vsel %vm1371_vm12, %v5147_v11, %v1370_v41  ;;  %v2372_v56 = vmul.f32 %v3816_v55, %v5160_v49  ;;  %v2341_v3 = vadd.f32 %v2340_v12, %v2339_v39  ;;  %v2676_v41 = vld [vmem:[#allocation6] sm:$0x1] }
 0x1e9   : > { %v1385_v8 = vsel %vm1339_vm7, %v1382_v16, 0.0  ;;  %v1375_v4 = vsel %vm1373_vm13, %v1374_v17, %v1372_v30  ;;  %v1356_v27 = vadd.f32 %v1355_v32, %v1346_v26  ;;  %v2397_v51 = vand.u32 2147483648, %v5173_v23  ;;  %v2399_v16 = vld [vmem:[#allocation5] sm:$0x1]  ;;  %v2680_v26 = vld [vmem:[#allocation7] sm:$0x1] }
 0x1ea   : > { %v1384_v40 = vsel %vm1339_vm7, %v1375_v4, 0.0  ;;  %v2374_v11 = vsel %vm2373_vm15, %v5160_v49, %v2372_v56  ;;  %v2342_v54 = vrot.slane %v2341_v3, 4  ;;  %vm2387_vm5 = vcmp.eq.f32.partialorder %v5178_v47, inf }
 0x1eb   : > { %v1386_v28 = vadd.f32 %v1385_v8, %v1384_v40  ;;  %v2377_v31 = vsel %vm2375_vm3, %v2376_v19, %v2374_v11  ;;  %1358 = vst.msk [vmem:[#allocation2] sm:$0x1] %vm588_vm1, %v1356_v27  ;;  %v2390_v5 = vand.u32 2147483648, %v5178_v47  ;;  %vm2396_vm6 = vcmp.eq.f32.partialorder %v5173_v23, 0.0 }
 0x1ec   : > { %v2400_v0 = vsel %vm2321_vm0, %v2377_v31, 0.0  ;;  %v3818_v62 = vpop.eup %3817  ;;  %v2343_v13 = vadd.f32 %v2342_v54, %v2341_v3  ;;  %vm2389_vm7 = vcmp.eq.f32.partialorder %v5178_v47, 0.0  ;;  %v2677_v25 = vsel %vm594_vm9, %v2676_v41, 0.0 }
 0x1ed   : > { %v1387_v59 = vrot.slane %v1386_v28, 4  ;;  %v2402_v42 = vadd.f32 %v2401_v35, %v2400_v0  ;;  %v2393_v43 = vmul.f32 %v3818_v62, %v5173_v23  ;;  %v2681_v8 = vsel %vm594_vm9, %v2680_v26, 0.0 }
 0x1ee   : > { %v2344_v50 = vrot.slane %v2343_v13, 2  ;;  %v3820_v37 = vpop.eup %3819 }
 0x1ef   : > { %v1388_v9 = vadd.f32 %v1387_v59, %v1386_v28  ;;  %v2395_v53 = vsel %vm2394_vm4, %v5173_v23, %v2393_v43  ;;  %v2386_v58 = vmul.f32 %v3820_v37, %v5178_v47 }
 0x1f0   : > { %v2345_v36 = vadd.f32 %v2344_v50, %v2343_v13  ;;  %v2398_v15 = vsel %vm2396_vm6, %v2397_v51, %v2395_v53 }
 0x1f1   : > { %v1389_v33 = vrot.slane %v1388_v9, 2  ;;  %v2388_v18 = vsel %vm2387_vm5, %v5178_v47, %v2386_v58  ;;  %v2405_v10 = vsel %vm2321_vm0, %v2398_v15, 0.0 }
 0x1f2   : > { %v2651_v7 = vld [vmem:[#allocation2] sm:$0x1]  ;;  %v2346_v21 = vrot.slane %v2345_v36, 1  ;;  %v2391_v57 = vsel %vm2389_vm7, %v2390_v5, %v2388_v18 }
 0x1f3   : > { %v1390_v49 = vadd.f32 %v1389_v33, %v1388_v9  ;;  %v2652_v60 = vsel %vm588_vm1, %v2651_v7, 0.0  ;;  %v2403_v29 = vsel %vm2321_vm0, %v2391_v57, 0.0 }
 0x1f4   : > { %2653 = vadd.xlane.f32.xlu0 %v2652_v60  ;;  %v2347_v22 = vadd.f32 %v2346_v21, %v2345_v36  ;;  %v2404_v48 = vadd.f32 %v2403_v29, %v2402_v42 }
 0x1f5   : > { %v1391_v24 = vrot.slane %v1390_v49, 1 }
 0x1f6   : > { %v2348_v46 = vadd.f32 %v2347_v22, %v2334_v2  ;;  %v2406_v45 = vadd.f32 %v2405_v10, %v2404_v48 }
 0x1f7   : > { %v1392_v1 = vadd.f32 %v1391_v24, %v1390_v49 }
 0x1f8   : > { %2350 = vst.msk [vmem:[#allocation4] sm:$0x1] %vm591_vm2, %v2348_v46  ;;  %v2407_v23 = vrot.slane %v2406_v45, 4 }
 0x1f9   : > { %v1393_v52 = vadd.f32 %v1392_v1, %v1383_v61 }
 0x1fa   : > { %v2408_v47 = vadd.f32 %v2407_v23, %v2406_v45 }
 0x1fb   : > { %1394 = vst.msk [vmem:[#allocation3] sm:$0x1] %vm588_vm1, %v1393_v52 }
 0x1fc   : > { %v2409_v44 = vrot.slane %v2408_v47, 2 }
 0x1fe   : > { %v2410_v6 = vadd.f32 %v2409_v44, %v2408_v47 }
 0x1ff   : > { %v2664_v14 = vld [vmem:[#allocation4] sm:$0x1] }
 0x200   : > { %v2665_v20 = vsel %vm591_vm2, %v2664_v14, 0.0  ;;  %v2411_v17 = vrot.slane %v2410_v6, 1 }
 0x201   : > { %2666 = vadd.xlane.f32.xlu1 %v2665_v20 }
 0x202   : > { %v2655_v63 = vld [vmem:[#allocation3] sm:$0x1]  ;;  %v2412_v32 = vadd.f32 %v2411_v17, %v2410_v6 }
 0x203   : > { %v2656_v38 = vsel %vm588_vm1, %v2655_v63, 0.0  ;;  %vm2660_vm1 = vcmask 0  }
 0x204   : > { %2657 = vadd.xlane.f32.xlu0 %v2656_v38  ;;  %v2413_v30 = vadd.f32 %v2412_v32, %v2399_v16 }
 0x206   : > { %2414 = vst.msk [vmem:[#allocation5] sm:$0x1] %vm591_vm2, %v2413_v30 }
 0x208   : > { %2678 = vadd.xlane.f32.xlu0 %v2677_v25 }
 0x20d   : > { %v2668_v34 = vld [vmem:[#allocation5] sm:$0x1] }
 0x20e   : > { %v2669_v55 = vsel %vm591_vm2, %v2668_v34, 0.0 }
 0x20f   : > { %2670 = vadd.xlane.f32.xlu1 %v2669_v55 }
 0x213   : > { %2682 = vadd.xlane.f32.xlu1 %v2681_v8 }
 0x281   : > { %v2654_v4 = vpop.xlane.xlu0 %2653 }
 0x282   : > { %v2659_v39 = vmul.f32 0.0009765625, %v2654_v4 }
 0x284   : > { %2661 = vst.msk [vmem:[%s568_s29] sm:$0x1] %vm2660_vm1, %v2659_v39 }
 0x28e   : > { %v2667_v40 = vpop.xlane.xlu1 %2666 }
 0x28f   : > { %v2672_v12 = vmul.f32 0.00024414063, %v2667_v40 }
 0x291   : > { %v2658_v56 = vpop.xlane.xlu0 %2657  ;;  %2673 = vst.msk [vmem:[%s574_s27] sm:$0x1] %vm2660_vm1, %v2672_v12 }
 0x292   : > { %v2662_v28 = vmul.f32 0.001953125, %v2658_v56 }
 0x294   : > { %2663 = vst.msk [vmem:[%s571_s26] sm:$0x1] %vm2660_vm1, %v2662_v28 }
 0x295   : > { %v2679_v19 = vpop.xlane.xlu0 %2678 }
 0x296   : > { %v2684_v3 = vmul.f32 6.1035156e-05, %v2679_v19 }
 0x298   : > { %2685 = vst.msk [vmem:[%s580_s30] sm:$0x1] %vm2660_vm1, %v2684_v3 }
 0x29c   : > { %v2671_v27 = vpop.xlane.xlu1 %2670 }
 0x29d   : > { %v2674_v35 = vmul.f32 0.00048828125, %v2671_v27 }
 0x29f   : > { %2675 = vst.msk [vmem:[%s577_s28] sm:$0x1] %vm2660_vm1, %v2674_v35 }
 0x2a0   : > { %v2683_v11 = vpop.xlane.xlu1 %2682 }
 0x2a1   : > { %v2686_v59 = vmul.f32 0.00012207031, %v2683_v11 }
 0x2a3   : > { %2687 = vst.msk [vmem:[%s583_s9] sm:$0x1] %vm2660_vm1, %v2686_v59 }
 0x2a4 PF: > { %s28_s22 = sadd.s32 1, %s3965_s22   ;;  %s5385_s2 = sld [smem:[#allocation15_spill]] }
 0x2a5   : > { %p25_p1 = scmp.ge.s32.totalorder %s28_s22, 4   ;;  %s5386_s19 = sld [smem:[#allocation18_spill]] }
 0x2a6   : > { %s5387_s20 = sld [smem:[#allocation16_spill]]  ;;  %s5388_s21 = sld [smem:[#allocation17_spill]] }
 0x2a7   : > { %s5389_s17 = smov %s3949_s18  ;;  %27 = sbr.rel (!%p25_p1) target bundleno = 10 (0xa), region = 202 }
 0x2aa   : > { %s5390_s18 = smov %s5385_s2 }
 0x2ae   :  { %2765 = vsyncpa [#allocation9], 1 }
 0x2af   :  { %2767 = vsyncpa [#allocation9 + $0x1], 1 }
 0x2b0   :  { %2768 = vsyncpa [#allocation11], 1 }
 0x2b1   :  { %2770 = vsyncpa [#allocation11 + $0x1], 1 }

</bundles_post_ra>
